<compile_context>
chip_gen: v7x
topology: tpu7x:2x2x1
jax: 0.10.0
libtpu: 0.0.40
codegen_flags: <defaults>
</compile_context>

<pallas_src>
import jax
import jax.numpy as jnp
from jax.experimental import pallas as pl
from jax.experimental.pallas import tpu as pltpu

LATENT = 20
IN_DIM = 784
HID = 400
MAX_TILE_B = 512   # ~14 MB working set at f32 x — fits every generation with 32 MiB limit


def _round_up(x, m):
    return ((x + m - 1) // m) * m


def _choose_tile_b(B):
    """Batch tile: <=512 rows, multiple of 128 for large B (full MXU M-pass on v5e),
    but >= 4 grid steps when possible so v7x megacore (>=2 parallel steps needed) and the
    DMA pipeline stay busy.  Small batches get one 8-row-aligned tile."""
    if B <= 128:
        return max(8, _round_up(B, 8))
    return min(MAX_TILE_B, _round_up(pl.cdiv(B, 4), 128))


def vae_kernel(x_ref, eps_ref,
               w1_ref, b1_ref, w2_ref, b2_ref,
               w3_ref, b3_ref, w4_ref, b4_ref,
               res_ref, enc_ref):
    bf16 = jnp.bfloat16
    # ---- encoder: Linear(784,400) + ReLU -> Linear(400, 2*latent) ----
    x = x_ref[...].astype(bf16)                      # accepts f32 or bf16 input
    h1 = jnp.dot(x, w1_ref[...], preferred_element_type=jnp.float32) + b1_ref[...]
    h1 = jnp.maximum(h1, 0.0)                        # f32 epilogue (v5e has no bf16 VPU)
    enc = jnp.dot(h1.astype(bf16), w2_ref[...],
                  preferred_element_type=jnp.float32) + b2_ref[...]
    means = enc[:, :LATENT]
    logvar = enc[:, LATENT:]
    # ---- reparameterize: z = mu + eps * exp(0.5 * logvar)  (f32, EUP exp) ----
    z = means + eps_ref[...] * jnp.exp(logvar * 0.5)
    # ---- decoder: Linear(latent,400) + ReLU -> Linear(400,784) + Sigmoid ----
    h2 = jnp.dot(z.astype(bf16), w3_ref[...],
                 preferred_element_type=jnp.float32) + b3_ref[...]
    h2 = jnp.maximum(h2, 0.0)
    logits = jnp.dot(h2.astype(bf16), w4_ref[...],
                     preferred_element_type=jnp.float32) + b4_ref[...]
    # bf16 store: res is the dominant HBM stream (mem-bound on v6e/v7x).
    res_ref[...] = jax.nn.sigmoid(logits).astype(res_ref.dtype)
    # single lane-dense (tile_b, 2*LATENT) slab; mean/logvar split happens outside
    enc_ref[...] = enc


def vae_forward(x, eps, params):
    """x: (B, 784) f32 or bf16, eps: (B, latent) f32 (the torch.randn_like noise).
    Returns (res[bf16], means[f32], logvars[f32])."""
    B = x.shape[0]
    w1, b1, w2, b2, w3, b3, w4, b4 = params

    tile_b = _choose_tile_b(B)
    n_tiles = pl.cdiv(B, tile_b)
    B_pad = n_tiles * tile_b
    if B_pad != B:
        # Padded tail rows run exp(0.5*logvar) on bias-only values (finite with this
        # init) and are sliced off below; harmless, but don't feed huge biases here.
        x = jnp.pad(x, ((0, B_pad - B), (0, 0)))
        eps = jnp.pad(eps, ((0, B_pad - B), (0, 0)))

    # batch-tiled tensors walk the grid; weights/biases stay resident in VMEM
    # (constant block index -> fetched once, reused across all grid steps).
    batch = lambda d: pl.BlockSpec((tile_b, d), lambda i: (i, 0))
    resident = lambda shape: pl.BlockSpec(shape, lambda i: (0, 0))

    in_specs = [
        batch(IN_DIM), batch(LATENT),
        resident((IN_DIM, HID)), resident((1, HID)),
        resident((HID, 2 * LATENT)), resident((1, 2 * LATENT)),
        resident((LATENT, HID)), resident((1, HID)),
        resident((HID, IN_DIM)), resident((1, IN_DIM)),
    ]
    out_specs = [batch(IN_DIM), batch(2 * LATENT)]
    out_shape = [
        jax.ShapeDtypeStruct((B_pad, IN_DIM), jnp.bfloat16),     # res in bf16
        jax.ShapeDtypeStruct((B_pad, 2 * LATENT), jnp.float32),  # mean/logvar slab
    ]

    # Advisory cost model so XLA can overlap neighboring ops around the custom call.
    flops = 2 * B_pad * (IN_DIM * HID + HID * 2 * LATENT + LATENT * HID + HID * IN_DIM)
    transcendentals = B_pad * (IN_DIM + LATENT)          # sigmoid(784) + exp(20) per row
    weight_bytes = sum(int(p.size) * p.dtype.itemsize
                       for p in (w1, b1, w2, b2, w3, b3, w4, b4))
    bytes_accessed = (B_pad * (IN_DIM * x.dtype.itemsize      # x in
                               + LATENT * 4                   # eps in
                               + IN_DIM * 2                   # res out (bf16)
                               + 2 * LATENT * 4)              # enc out
                      + weight_bytes)

    res, enc = pl.pallas_call(
        vae_kernel,
        grid=(n_tiles,),
        in_specs=in_specs,
        out_specs=out_specs,
        out_shape=out_shape,
        compiler_params=pltpu.CompilerParams(
            dimension_semantics=("parallel",),
            vmem_limit_bytes=32 * 1024 * 1024),
        cost_estimate=pl.CostEstimate(
            flops=flops,
            transcendentals=transcendentals,
            bytes_accessed=bytes_accessed),
    )(x, eps, w1, b1, w2, b2, w3, b3, w4, b4)

    if B_pad != B:
        # NOTE: this slice is a separate XLA copy (extra HBM pass); feed batch sizes that
        # are a multiple of the tile (or consume the padded arrays) to avoid it.
        res = res[:B]
        enc = enc[:B]
    means = enc[:, :LATENT]
    logvars = enc[:, LATENT:]
    return res, means, logvars


def init_params(key):
    """nn.Linear-style init U(-1/sqrt(fan_in), 1/sqrt(fan_in)); weights stored (in, out)
    in bf16 (x @ W == torch's x @ W.T), biases kept f32 for the f32 epilogue adds."""
    ks = jax.random.split(key, 8)

    def lin(kw, kb, fan_in, fan_out):
        bound = 1.0 / jnp.sqrt(jnp.float32(fan_in))
        w = jax.random.uniform(kw, (fan_in, fan_out), jnp.float32, -bound, bound)
        b = jax.random.uniform(kb, (1, fan_out), jnp.float32, -bound, bound)
        return w.astype(jnp.bfloat16), b

    w1, b1 = lin(ks[0], ks[1], IN_DIM, HID)
    w2, b2 = lin(ks[2], ks[3], HID, 2 * LATENT)
    w3, b3 = lin(ks[4], ks[5], LATENT, HID)
    w4, b4 = lin(ks[6], ks[7], HID, IN_DIM)
    return (w1, b1, w2, b2, w3, b3, w4, b4)


def ref_forward(x, eps, params):
    """Pure-JAX reference following the same bf16-weight / f32-accumulate math."""
    w1, b1, w2, b2, w3, b3, w4, b4 = params
    bf16, f32 = jnp.bfloat16, jnp.float32
    h1 = jnp.maximum(jnp.dot(x.astype(bf16), w1, preferred_element_type=f32) + b1, 0.0)
    enc = jnp.dot(h1.astype(bf16), w2, preferred_element_type=f32) + b2
    mu, lv = enc[:, :LATENT], enc[:, LATENT:]
    z = mu + eps * jnp.exp(0.5 * lv)
    h2 = jnp.maximum(jnp.dot(z.astype(bf16), w3, preferred_element_type=f32) + b3, 0.0)
    res = jax.nn.sigmoid(jnp.dot(h2.astype(bf16), w4, preferred_element_type=f32) + b4)
    return res, mu, lv


if __name__ == "__main__":
    key = jax.random.PRNGKey(0)
    k_param, k_x, k_eps = jax.random.split(key, 3)
    params = init_params(k_param)

    # --- small primary check: single tile, no padding ---
    B = 8
    x = jax.random.uniform(k_x, (B, IN_DIM), jnp.float32)      # flattened images in [0,1)
    eps = jax.random.normal(k_eps, (B, LATENT), jnp.float32)   # reparameterization noise

    res, means, logvars = vae_forward(x, eps, params)
    jax.block_until_ready((res, means, logvars))

    ref_res, ref_mu, ref_lv = ref_forward(x, eps, params)
    assert res.dtype == jnp.bfloat16
    assert jnp.allclose(res.astype(jnp.float32), ref_res, atol=1e-2, rtol=1e-2), "res mismatch"
    assert jnp.allclose(means, ref_mu, atol=2e-3, rtol=1e-3), "means mismatch"
    assert jnp.allclose(logvars, ref_lv, atol=2e-3, rtol=1e-3), "logvar mismatch"

    # --- multi-tile + padded-tail path (B=300 -> 3 tiles of 128, pad to 384) ---
    B2 = 300
    x2 = jax.random.uniform(jax.random.fold_in(k_x, 1), (B2, IN_DIM), jnp.float32)
    eps2 = jax.random.normal(jax.random.fold_in(k_eps, 1), (B2, LATENT), jnp.float32)
    res2, mu2, lv2 = vae_forward(x2, eps2, params)
    jax.block_until_ready((res2, mu2, lv2))
    rres2, rmu2, rlv2 = ref_forward(x2, eps2, params)
    assert jnp.allclose(res2.astype(jnp.float32), rres2, atol=1e-2, rtol=1e-2), "res2 mismatch"
    assert jnp.allclose(mu2, rmu2, atol=2e-3, rtol=1e-3), "means2 mismatch"
    assert jnp.allclose(lv2, rlv2, atol=2e-3, rtol=1e-3), "logvar2 mismatch"

    print("KERNEL_OK")
</pallas_src>

<mosaic_0001>
module attributes {stable_mosaic.version = 11 : i64} {
  func.func @vae_kernel(%arg0: i32, %arg1: memref<8x784xf32, #tpu.memory_space<vmem>>, %arg2: memref<8x20xf32, #tpu.memory_space<vmem>>, %arg3: memref<784x400xbf16, #tpu.memory_space<vmem>>, %arg4: memref<1x400xf32, #tpu.memory_space<vmem>>, %arg5: memref<400x40xbf16, #tpu.memory_space<vmem>>, %arg6: memref<1x40xf32, #tpu.memory_space<vmem>>, %arg7: memref<20x400xbf16, #tpu.memory_space<vmem>>, %arg8: memref<1x400xf32, #tpu.memory_space<vmem>>, %arg9: memref<400x784xbf16, #tpu.memory_space<vmem>>, %arg10: memref<1x784xf32, #tpu.memory_space<vmem>>, %arg11: memref<8x784xbf16, #tpu.memory_space<vmem>>, %arg12: memref<8x40xf32, #tpu.memory_space<vmem>>) attributes {dimension_semantics = [#tpu.dimension_semantics<parallel>], iteration_bounds = array<i64: 1>, scalar_prefetch = 0 : i64, scratch_operands = 0 : i64, tpu.core_type = #tpu.core_type<tc>, window_params = [{transform_indices = @transform_0, window_bounds = array<i64: 8, 784>}, {transform_indices = @transform_1, window_bounds = array<i64: 8, 20>}, {pipeline_mode = #tpu.pipeline_mode<synchronous>, transform_indices = @transform_2, window_bounds = array<i64: 784, 400>}, {pipeline_mode = #tpu.pipeline_mode<synchronous>, transform_indices = @transform_3, window_bounds = array<i64: 1, 400>}, {pipeline_mode = #tpu.pipeline_mode<synchronous>, transform_indices = @transform_4, window_bounds = array<i64: 400, 40>}, {pipeline_mode = #tpu.pipeline_mode<synchronous>, transform_indices = @transform_5, window_bounds = array<i64: 1, 40>}, {pipeline_mode = #tpu.pipeline_mode<synchronous>, transform_indices = @transform_6, window_bounds = array<i64: 20, 400>}, {pipeline_mode = #tpu.pipeline_mode<synchronous>, transform_indices = @transform_7, window_bounds = array<i64: 1, 400>}, {pipeline_mode = #tpu.pipeline_mode<synchronous>, transform_indices = @transform_8, window_bounds = array<i64: 400, 784>}, {pipeline_mode = #tpu.pipeline_mode<synchronous>, transform_indices = @transform_9, window_bounds = array<i64: 1, 784>}, {transform_indices = @transform_10, window_bounds = array<i64: 8, 784>}, {transform_indices = @transform_11, window_bounds = array<i64: 8, 40>}]} {
    %c0 = arith.constant 0 : index
    %c0_0 = arith.constant 0 : index
    %0 = vector.load %arg1[%c0, %c0_0] : memref<8x784xf32, #tpu.memory_space<vmem>>, vector<8x784xf32>
    %1 = arith.truncf %0 : vector<8x784xf32> to vector<8x784xbf16>
    %c0_1 = arith.constant 0 : index
    %c0_2 = arith.constant 0 : index
    %2 = vector.load %arg3[%c0_1, %c0_2] : memref<784x400xbf16, #tpu.memory_space<vmem>>, vector<784x400xbf16>
    %cst = arith.constant dense<0.000000e+00> : vector<8x400xf32>
    %3 = tpu.matmul %1, %2, %cst {dimension_numbers = #tpu.dot_dimension_numbers<[1], [0], [0], [1], [0, 0, 1, 1], [], []>} : vector<8x784xbf16>, vector<784x400xbf16>, vector<8x400xf32> -> vector<8x400xf32>
    %c0_3 = arith.constant 0 : index
    %c0_4 = arith.constant 0 : index
    %4 = vector.load %arg4[%c0_3, %c0_4] : memref<1x400xf32, #tpu.memory_space<vmem>>, vector<1x400xf32>
    %5 = vector.broadcast %4 : vector<1x400xf32> to vector<8x400xf32>
    %6 = arith.addf %3, %5 : vector<8x400xf32>
    %cst_5 = arith.constant 0.000000e+00 : f32
    %7 = vector.broadcast %cst_5 : f32 to vector<8x400xf32>
    %8 = arith.maximumf %6, %7 : vector<8x400xf32>
    %9 = arith.truncf %8 : vector<8x400xf32> to vector<8x400xbf16>
    %c0_6 = arith.constant 0 : index
    %c0_7 = arith.constant 0 : index
    %10 = vector.load %arg5[%c0_6, %c0_7] : memref<400x40xbf16, #tpu.memory_space<vmem>>, vector<400x40xbf16>
    %cst_8 = arith.constant dense<0.000000e+00> : vector<8x40xf32>
    %11 = tpu.matmul %9, %10, %cst_8 {dimension_numbers = #tpu.dot_dimension_numbers<[1], [0], [0], [1], [0, 0, 1, 1], [], []>} : vector<8x400xbf16>, vector<400x40xbf16>, vector<8x40xf32> -> vector<8x40xf32>
    %c0_9 = arith.constant 0 : index
    %c0_10 = arith.constant 0 : index
    %12 = vector.load %arg6[%c0_9, %c0_10] : memref<1x40xf32, #tpu.memory_space<vmem>>, vector<1x40xf32>
    %13 = vector.broadcast %12 : vector<1x40xf32> to vector<8x40xf32>
    %14 = arith.addf %11, %13 : vector<8x40xf32>
    %15 = vector.extract_strided_slice %14 {offsets = [0, 0], sizes = [8, 20], strides = [1, 1]} : vector<8x40xf32> to vector<8x20xf32>
    %16 = vector.extract_strided_slice %14 {offsets = [0, 20], sizes = [8, 20], strides = [1, 1]} : vector<8x40xf32> to vector<8x20xf32>
    %c0_11 = arith.constant 0 : index
    %c0_12 = arith.constant 0 : index
    %17 = vector.load %arg2[%c0_11, %c0_12] : memref<8x20xf32, #tpu.memory_space<vmem>>, vector<8x20xf32>
    %cst_13 = arith.constant 5.000000e-01 : f32
    %18 = vector.broadcast %cst_13 : f32 to vector<8x20xf32>
    %19 = arith.mulf %16, %18 : vector<8x20xf32>
    %20 = math.exp %19 : vector<8x20xf32>
    %21 = arith.mulf %17, %20 : vector<8x20xf32>
    %22 = arith.addf %15, %21 : vector<8x20xf32>
    %23 = arith.truncf %22 : vector<8x20xf32> to vector<8x20xbf16>
    %c0_14 = arith.constant 0 : index
    %c0_15 = arith.constant 0 : index
    %24 = vector.load %arg7[%c0_14, %c0_15] : memref<20x400xbf16, #tpu.memory_space<vmem>>, vector<20x400xbf16>
    %cst_16 = arith.constant dense<0.000000e+00> : vector<8x400xf32>
    %25 = tpu.matmul %23, %24, %cst_16 {dimension_numbers = #tpu.dot_dimension_numbers<[1], [0], [0], [1], [0, 0, 1, 1], [], []>} : vector<8x20xbf16>, vector<20x400xbf16>, vector<8x400xf32> -> vector<8x400xf32>
    %c0_17 = arith.constant 0 : index
    %c0_18 = arith.constant 0 : index
    %26 = vector.load %arg8[%c0_17, %c0_18] : memref<1x400xf32, #tpu.memory_space<vmem>>, vector<1x400xf32>
    %27 = vector.broadcast %26 : vector<1x400xf32> to vector<8x400xf32>
    %28 = arith.addf %25, %27 : vector<8x400xf32>
    %cst_19 = arith.constant 0.000000e+00 : f32
    %29 = vector.broadcast %cst_19 : f32 to vector<8x400xf32>
    %30 = arith.maximumf %28, %29 : vector<8x400xf32>
    %31 = arith.truncf %30 : vector<8x400xf32> to vector<8x400xbf16>
    %c0_20 = arith.constant 0 : index
    %c0_21 = arith.constant 0 : index
    %32 = vector.load %arg9[%c0_20, %c0_21] : memref<400x784xbf16, #tpu.memory_space<vmem>>, vector<400x784xbf16>
    %cst_22 = arith.constant dense<0.000000e+00> : vector<8x784xf32>
    %33 = tpu.matmul %31, %32, %cst_22 {dimension_numbers = #tpu.dot_dimension_numbers<[1], [0], [0], [1], [0, 0, 1, 1], [], []>} : vector<8x400xbf16>, vector<400x784xbf16>, vector<8x784xf32> -> vector<8x784xf32>
    %c0_23 = arith.constant 0 : index
    %c0_24 = arith.constant 0 : index
    %34 = vector.load %arg10[%c0_23, %c0_24] : memref<1x784xf32, #tpu.memory_space<vmem>>, vector<1x784xf32>
    %35 = vector.broadcast %34 : vector<1x784xf32> to vector<8x784xf32>
    %36 = arith.addf %33, %35 : vector<8x784xf32>
    %37 = arith.negf %36 : vector<8x784xf32>
    %38 = math.exp %37 : vector<8x784xf32>
    %cst_25 = arith.constant 1.000000e+00 : f32
    %39 = vector.broadcast %cst_25 : f32 to vector<8x784xf32>
    %40 = arith.addf %39, %38 : vector<8x784xf32>
    %41 = arith.divf %39, %40 : vector<8x784xf32>
    %42 = arith.truncf %41 : vector<8x784xf32> to vector<8x784xbf16>
    %c0_26 = arith.constant 0 : index
    %c0_27 = arith.constant 0 : index
    %43 = vector.load %arg11[%c0_26, %c0_27] : memref<8x784xbf16, #tpu.memory_space<vmem>>, vector<8x784xbf16>
    tpu.vector_store %arg11[%c0_26, %c0_27], %42 {strides = array<i32>} : memref<8x784xbf16, #tpu.memory_space<vmem>>, vector<8x784xbf16>,
    %c0_28 = arith.constant 0 : index
    %c0_29 = arith.constant 0 : index
    %44 = vector.load %arg12[%c0_28, %c0_29] : memref<8x40xf32, #tpu.memory_space<vmem>>, vector<8x40xf32>
    tpu.vector_store %arg12[%c0_28, %c0_29], %14 {strides = array<i32>} : memref<8x40xf32, #tpu.memory_space<vmem>>, vector<8x40xf32>,
    return
  }
  func.func @transform_0(%arg0: i32) -> (i32, i32) {
    %c0_i32 = arith.constant 0 : i32
    %c0_i32_0 = arith.constant 0 : i32
    return %arg0, %c0_i32 : i32, i32
  }
  func.func @transform_1(%arg0: i32) -> (i32, i32) {
    %c0_i32 = arith.constant 0 : i32
    %c0_i32_0 = arith.constant 0 : i32
    return %arg0, %c0_i32 : i32, i32
  }
  func.func @transform_2(%arg0: i32) -> (i32, i32) {
    %c0_i32 = arith.constant 0 : i32
    %c0_i32_0 = arith.constant 0 : i32
    %c0_i32_1 = arith.constant 0 : i32
    return %c0_i32, %c0_i32_0 : i32, i32
  }
  func.func @transform_3(%arg0: i32) -> (i32, i32) {
    %c0_i32 = arith.constant 0 : i32
    %c0_i32_0 = arith.constant 0 : i32
    %c0_i32_1 = arith.constant 0 : i32
    return %c0_i32, %c0_i32_0 : i32, i32
  }
  func.func @transform_4(%arg0: i32) -> (i32, i32) {
    %c0_i32 = arith.constant 0 : i32
    %c0_i32_0 = arith.constant 0 : i32
    %c0_i32_1 = arith.constant 0 : i32
    return %c0_i32, %c0_i32_0 : i32, i32
  }
  func.func @transform_5(%arg0: i32) -> (i32, i32) {
    %c0_i32 = arith.constant 0 : i32
    %c0_i32_0 = arith.constant 0 : i32
    %c0_i32_1 = arith.constant 0 : i32
    return %c0_i32, %c0_i32_0 : i32, i32
  }
  func.func @transform_6(%arg0: i32) -> (i32, i32) {
    %c0_i32 = arith.constant 0 : i32
    %c0_i32_0 = arith.constant 0 : i32
    %c0_i32_1 = arith.constant 0 : i32
    return %c0_i32, %c0_i32_0 : i32, i32
  }
  func.func @transform_7(%arg0: i32) -> (i32, i32) {
    %c0_i32 = arith.constant 0 : i32
    %c0_i32_0 = arith.constant 0 : i32
    %c0_i32_1 = arith.constant 0 : i32
    return %c0_i32, %c0_i32_0 : i32, i32
  }
  func.func @transform_8(%arg0: i32) -> (i32, i32) {
    %c0_i32 = arith.constant 0 : i32
    %c0_i32_0 = arith.constant 0 : i32
    %c0_i32_1 = arith.constant 0 : i32
    return %c0_i32, %c0_i32_0 : i32, i32
  }
  func.func @transform_9(%arg0: i32) -> (i32, i32) {
    %c0_i32 = arith.constant 0 : i32
    %c0_i32_0 = arith.constant 0 : i32
    %c0_i32_1 = arith.constant 0 : i32
    return %c0_i32, %c0_i32_0 : i32, i32
  }
  func.func @transform_10(%arg0: i32) -> (i32, i32) {
    %c0_i32 = arith.constant 0 : i32
    %c0_i32_0 = arith.constant 0 : i32
    return %arg0, %c0_i32 : i32, i32
  }
  func.func @transform_11(%arg0: i32) -> (i32, i32) {
    %c0_i32 = arith.constant 0 : i32
    %c0_i32_0 = arith.constant 0 : i32
    return %arg0, %c0_i32 : i32, i32
  }
}

</mosaic_0001>

<bundles_post_ra>
// kernel: tpu_custom_call.1
= control target key start
LH: loop header
LB: loop body
LE: loop exit
PB: predicated region body
PF: predicated region fallthrough
CT: control target
= control target key end

     0   :  { %17 = vsyncpa [#allocation3], 0  ;;  %v4810_v2 = vmov 0   ;;  %vm1252_vm0 = vcmask 130048   ;;  %s6253_s0 = inlined_call_operand.vmem [shape: f32[8,784], index: 0, kind: input, shape index: {}]   ;;  %s6254_s1 = inlined_call_operand.vmem [shape: f32[8,20], index: 1, kind: input, shape index: {}]   ;;  %s6255_s2 = inlined_call_operand.vmem [shape: bf16[784,400], index: 2, kind: input, shape index: {}]   ;;  %s6256_s3 = inlined_call_operand.vmem [shape: f32[1,400], index: 3, kind: input, shape index: {}]   ;;  %s6257_s4 = inlined_call_operand.vmem [shape: bf16[400,40], index: 4, kind: input, shape index: {}]   ;;  %s6258_s5 = inlined_call_operand.vmem [shape: f32[1,40], index: 5, kind: input, shape index: {}]   ;;  %s6259_s6 = inlined_call_operand.vmem [shape: bf16[20,400], index: 6, kind: input, shape index: {}]   ;;  %s6260_s7 = inlined_call_operand.vmem [shape: f32[1,400], index: 7, kind: input, shape index: {}]   ;;  %s6261_s8 = inlined_call_operand.vmem [shape: bf16[400,784], index: 8, kind: input, shape index: {}]   ;;  %s6262_s9 = inlined_call_operand.vmem [shape: f32[1,784], index: 9, kind: input, shape index: {}]   ;;  %s6263_s10 = inlined_call_operand.hbm [shape: bf16[8,784], index: 10, kind: output, shape index: {0}]   ;;  %s6264_s11 = inlined_call_operand.hbm [shape: f32[8,40], index: 11, kind: output, shape index: {1}]  }
   0x1   :  { %v4153_v0 = vld [vmem:[%s6255_s2 + $0x4] ss:$16 sps:$4 sm:$0xff]   ;;  %1411 = vmatprep.mubr.bf16.mxu1 %v4810_v2  ;;  %v4157_v3 = vld [vmem:[%s6255_s2] ss:$16 sps:$4 sm:$0xff]   ;;  %v4161_v8 = vld [vmem:[%s6255_s2 + $0x8] ss:$16 sps:$4 sm:$0xff]  }
   0x2   :  { %v4155_v1 = vld [vmem:[%s6255_s2 + $0x604] ss:$16 sps:$4 sm:$0xff]   ;;  %1256 = vmatprep.subr.bf16.mxu0 %v4153_v0  ;;  %v4158_v4 = vld [vmem:[%s6255_s2 + $0x600] ss:$16 sps:$4 sm:$0xff]   ;;  %v4163_v9 = vld [vmem:[%s6255_s2 + $0xc] ss:$16 sps:$4 sm:$0xff]  }
   0x3   :  { %1379 = vmatprep.subr.bf16.mxu1 %v4155_v1  ;;  %v4159_v5 = vld [vmem:[%s6255_s2 + $0x24] ss:$16 sps:$4 sm:$0xff]   ;;  %1257 = vmatpush1.bf16.msra.mxu0 %v4157_v3  ;;  %v4164_v10 = vld [vmem:[%s6255_s2 + $0x20] ss:$16 sps:$4 sm:$0xff]   ;;  %v4167_v12 = vld [vmem:[%s6255_s2 + $0x28] ss:$16 sps:$4 sm:$0xff]  }
   0x4   :  { %v46_v6 = vld [vmem:[%s6253_s0 + $0x30] sm:$0xff]  ;;  %1380 = vmatpush1.bf16.msra.mxu1 %v4158_v4  ;;  %1258 = vmatprep.subr.bf16.mxu0 %v4159_v5  ;;  %v4169_v13 = vld [vmem:[%s6255_s2 + $0x2c] ss:$16 sps:$4 sm:$0xff]   ;;  %v4173_v17 = vld [vmem:[%s6255_s2 + $0x48] ss:$16 sps:$4 sm:$0xff]  }
   0x5   :  { %v4893_v7 = vpack.c.bf16 %v46_v6, %v46_v6  ;;  %v4165_v11 = vld [vmem:[%s6255_s2 + $0x44] ss:$16 sps:$4 sm:$0xff]   ;;  %1420 = vmatprep.subr.bf16.mxu1 %v4163_v9  ;;  %v4170_v14 = vld [vmem:[%s6255_s2 + $0x40] ss:$16 sps:$4 sm:$0xff]   ;;  %v4175_v16 = vld [vmem:[%s6255_s2 + $0x4c] ss:$16 sps:$4 sm:$0xff]  }
   0x6   :  { %v4171_v15 = vld [vmem:[%s6255_s2 + $0x64] ss:$16 sps:$4 sm:$0xff]   ;;  %v4176_v18 = vld [vmem:[%s6255_s2 + $0x60] ss:$16 sps:$4 sm:$0xff]   ;;  %v4181_v20 = vld [vmem:[%s6255_s2 + $0x6c] ss:$16 sps:$4 sm:$0xff]  }
   0x7   :  { %3826 = vmatmul.mubr.msk.bf16.vlgmr.msra.gmra.mrb[0].mxu1 %vm1252_vm0, %v4893_v7  ;;  %1259 = vmatpush1.bf16.msra.mxu0 %v4164_v10  ;;  %v4177_v19 = vld [vmem:[%s6255_s2 + $0x84] ss:$16 sps:$4 sm:$0xff]   ;;  %v4179_v21 = vld [vmem:[%s6255_s2 + $0x68] ss:$16 sps:$4 sm:$0xff]   ;;  %v4182_v22 = vld [vmem:[%s6255_s2 + $0x80] ss:$16 sps:$4 sm:$0xff]  }
   0x8   :  { %1421 = vmatpush1.bf16.msra.mxu1 %v4161_v8  ;;  %1260 = vmatprep.subr.bf16.mxu0 %v4165_v11  ;;  %v4183_v23 = vld [vmem:[%s6255_s2 + $0xa4] ss:$16 sps:$4 sm:$0xff]   ;;  %v4187_v24 = vld [vmem:[%s6255_s2 + $0x8c] ss:$16 sps:$4 sm:$0xff]   ;;  %v4185_v25 = vld [vmem:[%s6255_s2 + $0x88] ss:$16 sps:$4 sm:$0xff]  }
   0x9   :  { %1422 = vmatprep.subr.bf16.mxu1 %v4169_v13  ;;  %v4188_v26 = vld [vmem:[%s6255_s2 + $0xa0] ss:$16 sps:$4 sm:$0xff]   ;;  %v4189_v27 = vld [vmem:[%s6255_s2 + $0xc4] ss:$16 sps:$4 sm:$0xff]   ;;  %v4193_v28 = vld [vmem:[%s6255_s2 + $0xac] ss:$16 sps:$4 sm:$0xff]  }
   0xa   :  { %v4191_v29 = vld [vmem:[%s6255_s2 + $0xa8] ss:$16 sps:$4 sm:$0xff]   ;;  %v4194_v30 = vld [vmem:[%s6255_s2 + $0xc0] ss:$16 sps:$4 sm:$0xff]   ;;  %v4195_v31 = vld [vmem:[%s6255_s2 + $0xe4] ss:$16 sps:$4 sm:$0xff]  }
   0xb   :  { %1261 = vmatpush1.bf16.msra.mxu0 %v4170_v14  ;;  %v4199_v32 = vld [vmem:[%s6255_s2 + $0xcc] ss:$16 sps:$4 sm:$0xff]   ;;  %v4197_v33 = vld [vmem:[%s6255_s2 + $0xc8] ss:$16 sps:$4 sm:$0xff]   ;;  %v4200_v34 = vld [vmem:[%s6255_s2 + $0xe0] ss:$16 sps:$4 sm:$0xff]  }
   0xc   :  { %1423 = vmatpush1.bf16.msra.mxu1 %v4167_v12  ;;  %1262 = vmatprep.subr.bf16.mxu0 %v4171_v15  ;;  %v4201_v35 = vld [vmem:[%s6255_s2 + $0x104] ss:$16 sps:$4 sm:$0xff]   ;;  %v4205_v36 = vld [vmem:[%s6255_s2 + $0xec] ss:$16 sps:$4 sm:$0xff]   ;;  %v4203_v37 = vld [vmem:[%s6255_s2 + $0xe8] ss:$16 sps:$4 sm:$0xff]  }
   0xd   :  { %1424 = vmatprep.subr.bf16.mxu1 %v4175_v16  ;;  %v4206_v38 = vld [vmem:[%s6255_s2 + $0x100] ss:$16 sps:$4 sm:$0xff]   ;;  %v4207_v39 = vld [vmem:[%s6255_s2 + $0x124] ss:$16 sps:$4 sm:$0xff]   ;;  %v4211_v40 = vld [vmem:[%s6255_s2 + $0x10c] ss:$16 sps:$4 sm:$0xff]  }
   0xe   :  { %v4209_v41 = vld [vmem:[%s6255_s2 + $0x108] ss:$16 sps:$4 sm:$0xff]   ;;  %v4212_v42 = vld [vmem:[%s6255_s2 + $0x120] ss:$16 sps:$4 sm:$0xff]   ;;  %v4213_v43 = vld [vmem:[%s6255_s2 + $0x144] ss:$16 sps:$4 sm:$0xff]  }
   0xf   :  { %1263 = vmatpush1.bf16.msra.mxu0 %v4176_v18  ;;  %v4217_v44 = vld [vmem:[%s6255_s2 + $0x12c] ss:$16 sps:$4 sm:$0xff]   ;;  %v4215_v45 = vld [vmem:[%s6255_s2 + $0x128] ss:$16 sps:$4 sm:$0xff]   ;;  %v4218_v46 = vld [vmem:[%s6255_s2 + $0x140] ss:$16 sps:$4 sm:$0xff]  }
  0x10   :  { %1425 = vmatpush1.bf16.msra.mxu1 %v4173_v17  ;;  %1264 = vmatprep.subr.bf16.mxu0 %v4177_v19  ;;  %v4219_v47 = vld [vmem:[%s6255_s2 + $0x164] ss:$16 sps:$4 sm:$0xff]   ;;  %v4223_v48 = vld [vmem:[%s6255_s2 + $0x14c] ss:$16 sps:$4 sm:$0xff]   ;;  %v4221_v50 = vld [vmem:[%s6255_s2 + $0x148] ss:$16 sps:$4 sm:$0xff]  }
  0x11   :  { %1426 = vmatprep.subr.bf16.mxu1 %v4181_v20  ;;  %v41_v49 = vld [vmem:[%s6253_s0 + $0x8] sm:$0xff]  ;;  %v4224_v51 = vld [vmem:[%s6255_s2 + $0x160] ss:$16 sps:$4 sm:$0xff]   ;;  %v4225_v53 = vld [vmem:[%s6255_s2 + $0x184] ss:$16 sps:$4 sm:$0xff]  }
  0x12   :  { %v48_v52 = vpack.c.bf16 %v41_v49, %v41_v49  ;;  %v4229_v54 = vld [vmem:[%s6255_s2 + $0x16c] ss:$16 sps:$4 sm:$0xff]   ;;  %v4227_v55 = vld [vmem:[%s6255_s2 + $0x168] ss:$16 sps:$4 sm:$0xff]   ;;  %v4230_v56 = vld [vmem:[%s6255_s2 + $0x180] ss:$16 sps:$4 sm:$0xff]  }
  0x13   :  { %1265 = vmatpush1.bf16.msra.mxu0 %v4182_v22  ;;  %v4231_v57 = vld [vmem:[%s6255_s2 + $0x1a4] ss:$16 sps:$4 sm:$0xff]   ;;  %v4235_v58 = vld [vmem:[%s6255_s2 + $0x18c] ss:$16 sps:$4 sm:$0xff]   ;;  %v4233_v59 = vld [vmem:[%s6255_s2 + $0x188] ss:$16 sps:$4 sm:$0xff]  }
  0x14   :  { %1427 = vmatpush1.bf16.msra.mxu1 %v4179_v21  ;;  %1266 = vmatprep.subr.bf16.mxu0 %v4183_v23  ;;  %v4236_v60 = vld [vmem:[%s6255_s2 + $0x1a0] ss:$16 sps:$4 sm:$0xff]   ;;  %v4237_v61 = vld [vmem:[%s6255_s2 + $0x1c4] ss:$16 sps:$4 sm:$0xff]   ;;  %v4241_v62 = vld [vmem:[%s6255_s2 + $0x1ac] ss:$16 sps:$4 sm:$0xff]  }
  0x15   :  { %1428 = vmatprep.subr.bf16.mxu1 %v4187_v24  ;;  %1288 = vmatprep.mubr.bf16.mxu0 %v48_v52  ;;  %v4239_v63 = vld [vmem:[%s6255_s2 + $0x1a8] ss:$16 sps:$4 sm:$0xff]   ;;  %v4242_v0 = vld [vmem:[%s6255_s2 + $0x1c0] ss:$16 sps:$4 sm:$0xff]   ;;  %v4243_v1 = vld [vmem:[%s6255_s2 + $0x1e4] ss:$16 sps:$4 sm:$0xff]  }
  0x16   :  { %1452 = vmatprep.mubr.bf16.mxu1 %v48_v52  ;;  %v4247_v3 = vld [vmem:[%s6255_s2 + $0x1cc] ss:$16 sps:$4 sm:$0xff]   ;;  %v4245_v4 = vld [vmem:[%s6255_s2 + $0x1c8] ss:$16 sps:$4 sm:$0xff]   ;;  %v4248_v5 = vld [vmem:[%s6255_s2 + $0x1e0] ss:$16 sps:$4 sm:$0xff]  }
  0x17   :  { %1267 = vmatpush1.bf16.msra.mxu0 %v4188_v26  ;;  %v4251_v6 = vld [vmem:[%s6255_s2 + $0x204] ss:$16 sps:$4 sm:$0xff]   ;;  %v4254_v9 = vld [vmem:[%s6255_s2 + $0x1ec] ss:$16 sps:$4 sm:$0xff]   ;;  %v4249_v10 = vld [vmem:[%s6255_s2 + $0x200] ss:$16 sps:$4 sm:$0xff]  }
  0x18   :  { %1429 = vmatpush1.bf16.msra.mxu1 %v4185_v25  ;;  %1268 = vmatprep.subr.bf16.mxu0 %v4189_v27  ;;  %v40_v8 = vld [vmem:[%s6253_s0] sm:$0xff]  ;;  %v4252_v12 = vld [vmem:[%s6255_s2 + $0x1e8] ss:$16 sps:$4 sm:$0xff]   ;;  %v4260_v14 = vld [vmem:[%s6255_s2 + $0x20c] ss:$16 sps:$4 sm:$0xff]  }
  0x19   :  { %1430 = vmatprep.subr.bf16.mxu1 %v4193_v28  ;;  %v47_v11 = vpack.c.bf16 %v40_v8, %v40_v8  ;;  %v4257_v13 = vld [vmem:[%s6255_s2 + $0x224] ss:$16 sps:$4 sm:$0xff]   ;;  %v4255_v15 = vld [vmem:[%s6255_s2 + $0x220] ss:$16 sps:$4 sm:$0xff]   ;;  %v4258_v16 = vld [vmem:[%s6255_s2 + $0x208] ss:$16 sps:$4 sm:$0xff]  }
  0x1a   :  { %v4263_v17 = vld [vmem:[%s6255_s2 + $0x244] ss:$16 sps:$4 sm:$0xff]   ;;  %v4266_v18 = vld [vmem:[%s6255_s2 + $0x22c] ss:$16 sps:$4 sm:$0xff]   ;;  %v4261_v19 = vld [vmem:[%s6255_s2 + $0x240] ss:$16 sps:$4 sm:$0xff]  }
  0x1b   :  { %1269 = vmatpush1.bf16.msra.mxu0 %v4194_v30  ;;  %v4264_v20 = vld [vmem:[%s6255_s2 + $0x228] ss:$16 sps:$4 sm:$0xff]   ;;  %v4269_v21 = vld [vmem:[%s6255_s2 + $0x264] ss:$16 sps:$4 sm:$0xff]   ;;  %v4272_v22 = vld [vmem:[%s6255_s2 + $0x24c] ss:$16 sps:$4 sm:$0xff]  }
  0x1c   :  { %1431 = vmatpush1.bf16.msra.mxu1 %v4191_v29  ;;  %1270 = vmatprep.subr.bf16.mxu0 %v4195_v31  ;;  %v4267_v23 = vld [vmem:[%s6255_s2 + $0x260] ss:$16 sps:$4 sm:$0xff]   ;;  %v4270_v24 = vld [vmem:[%s6255_s2 + $0x248] ss:$16 sps:$4 sm:$0xff]   ;;  %v4275_v25 = vld [vmem:[%s6255_s2 + $0x284] ss:$16 sps:$4 sm:$0xff]  }
  0x1d   :  { %1432 = vmatprep.subr.bf16.mxu1 %v4199_v32  ;;  %v4278_v26 = vld [vmem:[%s6255_s2 + $0x26c] ss:$16 sps:$4 sm:$0xff]   ;;  %v4273_v27 = vld [vmem:[%s6255_s2 + $0x280] ss:$16 sps:$4 sm:$0xff]   ;;  %v4276_v28 = vld [vmem:[%s6255_s2 + $0x268] ss:$16 sps:$4 sm:$0xff]  }
  0x1e   :  { %v4281_v29 = vld [vmem:[%s6255_s2 + $0x2a4] ss:$16 sps:$4 sm:$0xff]   ;;  %v4284_v30 = vld [vmem:[%s6255_s2 + $0x28c] ss:$16 sps:$4 sm:$0xff]   ;;  %v4279_v31 = vld [vmem:[%s6255_s2 + $0x2a0] ss:$16 sps:$4 sm:$0xff]  }
  0x1f   :  { %1271 = vmatpush1.bf16.msra.mxu0 %v4200_v34  ;;  %v4282_v32 = vld [vmem:[%s6255_s2 + $0x288] ss:$16 sps:$4 sm:$0xff]   ;;  %v4290_v34 = vld [vmem:[%s6255_s2 + $0x2ac] ss:$16 sps:$4 sm:$0xff]   ;;  %v4303_v49 = vld [vmem:[%s6255_s2 + $0x320] ss:$16 sps:$4 sm:$0xff]  }
  0x20   :  { %1433 = vmatpush1.bf16.msra.mxu1 %v4197_v33  ;;  %1272 = vmatprep.subr.bf16.mxu0 %v4201_v35  ;;  %v4287_v33 = vld [vmem:[%s6255_s2 + $0x2c4] ss:$16 sps:$4 sm:$0xff]   ;;  %v43_v35 = vld [vmem:[%s6253_s0 + $0x18] sm:$0xff] }
  0x21   :  { %1434 = vmatprep.subr.bf16.mxu1 %v4205_v36  ;;  %v4285_v36 = vld [vmem:[%s6255_s2 + $0x2c0] ss:$16 sps:$4 sm:$0xff]   ;;  %v4314_v52 = vld [vmem:[%s6255_s2 + $0x32c] ss:$16 sps:$4 sm:$0xff]   ;;  %v4336_v8 = vld [vmem:[%s6255_s2 + $0x3a8] ss:$16 sps:$4 sm:$0xff]  }
  0x23   :  { %1273 = vmatpush1.bf16.msra.mxu0 %v4206_v38  ;;  %v4288_v38 = vld [vmem:[%s6255_s2 + $0x2a8] ss:$16 sps:$4 sm:$0xff]  }
  0x24   :  { %1435 = vmatpush1.bf16.msra.mxu1 %v4203_v37  ;;  %1274 = vmatprep.subr.bf16.mxu0 %v4207_v39  ;;  %v50_v37 = vpack.c.bf16 %v43_v35, %v43_v35  ;;  %v4293_v39 = vld [vmem:[%s6255_s2 + $0x2e4] ss:$16 sps:$4 sm:$0xff]   ;;  %v4369_v35 = vld [vmem:[%s6255_s2 + $0x480] ss:$16 sps:$4 sm:$0xff]  }
  0x25   :  { %1436 = vmatprep.subr.bf16.mxu1 %v4211_v40  ;;  %v4296_v40 = vld [vmem:[%s6255_s2 + $0x2cc] ss:$16 sps:$4 sm:$0xff]  }
  0x27   :  { %1275 = vmatpush1.bf16.msra.mxu0 %v4212_v42  ;;  %v4294_v42 = vld [vmem:[%s6255_s2 + $0x2c8] ss:$16 sps:$4 sm:$0xff]  }
  0x28   :  { %1437 = vmatpush1.bf16.msra.mxu1 %v4209_v41  ;;  %1276 = vmatprep.subr.bf16.mxu0 %v4213_v43  ;;  %v4291_v41 = vld [vmem:[%s6255_s2 + $0x2e0] ss:$16 sps:$4 sm:$0xff]   ;;  %v4299_v43 = vld [vmem:[%s6255_s2 + $0x304] ss:$16 sps:$4 sm:$0xff]  }
  0x29   :  { %1438 = vmatprep.subr.bf16.mxu1 %v4217_v44  ;;  %v4302_v44 = vld [vmem:[%s6255_s2 + $0x2ec] ss:$16 sps:$4 sm:$0xff]  }
  0x2b   :  { %1277 = vmatpush1.bf16.msra.mxu0 %v4218_v46  ;;  %v4300_v46 = vld [vmem:[%s6255_s2 + $0x2e8] ss:$16 sps:$4 sm:$0xff]  }
  0x2c   :  { %1439 = vmatpush1.bf16.msra.mxu1 %v4215_v45  ;;  %1278 = vmatprep.subr.bf16.mxu0 %v4219_v47  ;;  %v4297_v45 = vld [vmem:[%s6255_s2 + $0x300] ss:$16 sps:$4 sm:$0xff]   ;;  %v4305_v47 = vld [vmem:[%s6255_s2 + $0x324] ss:$16 sps:$4 sm:$0xff]  }
  0x2d   :  { %1440 = vmatprep.subr.bf16.mxu1 %v4223_v48  ;;  %v4308_v48 = vld [vmem:[%s6255_s2 + $0x30c] ss:$16 sps:$4 sm:$0xff]  }
  0x2f   :  { %1279 = vmatpush1.bf16.msra.mxu0 %v4224_v51  ;;  %v4311_v51 = vld [vmem:[%s6255_s2 + $0x344] ss:$16 sps:$4 sm:$0xff]  }
  0x30   :  { %1441 = vmatpush1.bf16.msra.mxu1 %v4221_v50  ;;  %1280 = vmatprep.subr.bf16.mxu0 %v4225_v53  ;;  %v4306_v50 = vld [vmem:[%s6255_s2 + $0x308] ss:$16 sps:$4 sm:$0xff]   ;;  %v4309_v53 = vld [vmem:[%s6255_s2 + $0x340] ss:$16 sps:$4 sm:$0xff]  }
  0x31   :  { %1442 = vmatprep.subr.bf16.mxu1 %v4229_v54  ;;  %v4312_v54 = vld [vmem:[%s6255_s2 + $0x328] ss:$16 sps:$4 sm:$0xff]  }
  0x33   :  { %1281 = vmatpush1.bf16.msra.mxu0 %v4230_v56  ;;  %v4320_v56 = vld [vmem:[%s6255_s2 + $0x34c] ss:$16 sps:$4 sm:$0xff]  }
  0x34   :  { %1443 = vmatpush1.bf16.msra.mxu1 %v4227_v55  ;;  %1282 = vmatprep.subr.bf16.mxu0 %v4231_v57  ;;  %v4317_v55 = vld [vmem:[%s6255_s2 + $0x364] ss:$16 sps:$4 sm:$0xff]   ;;  %v4315_v57 = vld [vmem:[%s6255_s2 + $0x360] ss:$16 sps:$4 sm:$0xff]  }
  0x35   :  { %1444 = vmatprep.subr.bf16.mxu1 %v4235_v58  ;;  %v4318_v58 = vld [vmem:[%s6255_s2 + $0x348] ss:$16 sps:$4 sm:$0xff]  }
  0x37   :  { %1283 = vmatpush1.bf16.msra.mxu0 %v4236_v60  ;;  %v4326_v60 = vld [vmem:[%s6255_s2 + $0x36c] ss:$16 sps:$4 sm:$0xff]  }
  0x38   :  { %1445 = vmatpush1.bf16.msra.mxu1 %v4233_v59  ;;  %1284 = vmatprep.subr.bf16.mxu0 %v4237_v61  ;;  %v4323_v59 = vld [vmem:[%s6255_s2 + $0x384] ss:$16 sps:$4 sm:$0xff]   ;;  %v4321_v61 = vld [vmem:[%s6255_s2 + $0x380] ss:$16 sps:$4 sm:$0xff]  }
  0x39   :  { %1446 = vmatprep.subr.bf16.mxu1 %v4241_v62  ;;  %v4324_v62 = vld [vmem:[%s6255_s2 + $0x368] ss:$16 sps:$4 sm:$0xff]  }
  0x3b   :  { %1285 = vmatpush1.bf16.msra.mxu0 %v4242_v0  ;;  %v4332_v0 = vld [vmem:[%s6255_s2 + $0x38c] ss:$16 sps:$4 sm:$0xff]  }
  0x3c   :  { %1447 = vmatpush1.bf16.msra.mxu1 %v4239_v63  ;;  %1286 = vmatprep.subr.bf16.mxu0 %v4243_v1  ;;  %v4329_v63 = vld [vmem:[%s6255_s2 + $0x3a4] ss:$16 sps:$4 sm:$0xff]   ;;  %v4327_v1 = vld [vmem:[%s6255_s2 + $0x3a0] ss:$16 sps:$4 sm:$0xff]  }
  0x3d   :  { %1448 = vmatprep.subr.bf16.mxu1 %v4247_v3  ;;  %v4330_v3 = vld [vmem:[%s6255_s2 + $0x388] ss:$16 sps:$4 sm:$0xff]  }
  0x3f   :  { %1287 = vmatpush1.bf16.msra.mxu0 %v4248_v5  ;;  %v4338_v5 = vld [vmem:[%s6255_s2 + $0x3ac] ss:$16 sps:$4 sm:$0xff]  }
  0x40   :  { %1449 = vmatpush1.bf16.msra.mxu1 %v4245_v4  ;;  %1297 = vmatprep.subr.bf16.mxu0 %v4251_v6  ;;  %v4335_v4 = vld [vmem:[%s6255_s2 + $0x3c4] ss:$16 sps:$4 sm:$0xff]   ;;  %v4333_v6 = vld [vmem:[%s6255_s2 + $0x3c0] ss:$16 sps:$4 sm:$0xff]  }
  0x41   :  { %1450 = vmatprep.subr.bf16.mxu1 %v4254_v9  ;;  %v4341_v9 = vld [vmem:[%s6255_s2 + $0x3e4] ss:$16 sps:$4 sm:$0xff]  }
  0x42   :  { %1289 = vmatmul.mubr.bf16.vlgmr.msra.gmra.mrb[0].mxu0 %v47_v11 }
  0x43   :  { %1298 = vmatpush1.bf16.msra.mxu0 %v4249_v10  ;;  %1329 = vmatprep.mubr.bf16.mxu0 %v50_v37  ;;  %v4344_v10 = vld [vmem:[%s6255_s2 + $0x3cc] ss:$16 sps:$4 sm:$0xff]  }
  0x44   :  { %1451 = vmatpush1.bf16.msra.mxu1 %v4252_v12  ;;  %1299 = vmatprep.subr.bf16.mxu0 %v4257_v13  ;;  %v4342_v12 = vld [vmem:[%s6255_s2 + $0x3c8] ss:$16 sps:$4 sm:$0xff]   ;;  %v42_v13 = vld [vmem:[%s6253_s0 + $0x10] sm:$0xff] }
  0x45   :  { %1461 = vmatprep.subr.bf16.mxu1 %v4260_v14  ;;  %v4347_v14 = vld [vmem:[%s6255_s2 + $0x404] ss:$16 sps:$4 sm:$0xff]  }
  0x47   :  { %1453 = vmatmul.mubr.bf16.vlgmr.msra.gmra.mrb[4].mxu1 %v47_v11  ;;  %1300 = vmatpush1.bf16.msra.mxu0 %v4255_v15  ;;  %v4339_v11 = vld [vmem:[%s6255_s2 + $0x3e0] ss:$16 sps:$4 sm:$0xff]   ;;  %v4350_v15 = vld [vmem:[%s6255_s2 + $0x3ec] ss:$16 sps:$4 sm:$0xff]  }
  0x48   :  { %1462 = vmatpush1.bf16.msra.mxu1 %v4258_v16  ;;  %1301 = vmatprep.subr.bf16.mxu0 %v4263_v17  ;;  %v4345_v16 = vld [vmem:[%s6255_s2 + $0x400] ss:$16 sps:$4 sm:$0xff]   ;;  %v49_v17 = vpack.c.bf16 %v42_v13, %v42_v13 }
  0x49   :  { %1463 = vmatprep.subr.bf16.mxu1 %v4266_v18  ;;  %1493 = vmatprep.mubr.bf16.mxu1 %v50_v37  ;;  %v4348_v18 = vld [vmem:[%s6255_s2 + $0x3e8] ss:$16 sps:$4 sm:$0xff]   ;;  %v4377_v37 = vld [vmem:[%s6255_s2 + $0x4a4] ss:$16 sps:$4 sm:$0xff]   ;;  %v4429_v13 = vld [vmem:[%s6255_s2 + $0x5c0] ss:$16 sps:$4 sm:$0xff]  }
  0x4b   :  { %1302 = vmatpush1.bf16.msra.mxu0 %v4261_v19  ;;  %v4353_v19 = vld [vmem:[%s6255_s2 + $0x424] ss:$16 sps:$4 sm:$0xff]  }
  0x4c   :  { %1464 = vmatpush1.bf16.msra.mxu1 %v4264_v20  ;;  %1303 = vmatprep.subr.bf16.mxu0 %v4269_v21  ;;  %v4356_v20 = vld [vmem:[%s6255_s2 + $0x40c] ss:$16 sps:$4 sm:$0xff]  }
  0x4d   :  { %1465 = vmatprep.subr.bf16.mxu1 %v4272_v22  ;;  %v45_v21 = vld [vmem:[%s6253_s0 + $0x28] sm:$0xff] }
  0x4e   :  { %v52_v22 = vpack.c.bf16 %v45_v21, %v45_v21  ;;  %v4447_v21 = vld [vmem:[%s6257_s4 + $0x40] sm:$0xff]  }
  0x4f   :  { %1304 = vmatpush1.bf16.msra.mxu0 %v4267_v23  ;;  %v4351_v23 = vld [vmem:[%s6255_s2 + $0x420] ss:$16 sps:$4 sm:$0xff]  }
  0x50   :  { %1466 = vmatpush1.bf16.msra.mxu1 %v4270_v24  ;;  %1305 = vmatprep.subr.bf16.mxu0 %v4275_v25  ;;  %v4354_v24 = vld [vmem:[%s6255_s2 + $0x408] ss:$16 sps:$4 sm:$0xff]   ;;  %v4359_v25 = vld [vmem:[%s6255_s2 + $0x444] ss:$16 sps:$4 sm:$0xff]  }
  0x51   :  { %1467 = vmatprep.subr.bf16.mxu1 %v4278_v26  ;;  %v4362_v26 = vld [vmem:[%s6255_s2 + $0x42c] ss:$16 sps:$4 sm:$0xff]  }
  0x53   :  { %1306 = vmatpush1.bf16.msra.mxu0 %v4273_v27  ;;  %v4357_v27 = vld [vmem:[%s6255_s2 + $0x440] ss:$16 sps:$4 sm:$0xff]  }
  0x54   :  { %1468 = vmatpush1.bf16.msra.mxu1 %v4276_v28  ;;  %1307 = vmatprep.subr.bf16.mxu0 %v4281_v29  ;;  %v4360_v28 = vld [vmem:[%s6255_s2 + $0x428] ss:$16 sps:$4 sm:$0xff]   ;;  %v4365_v29 = vld [vmem:[%s6255_s2 + $0x464] ss:$16 sps:$4 sm:$0xff]  }
  0x55   :  { %1469 = vmatprep.subr.bf16.mxu1 %v4284_v30  ;;  %v4368_v30 = vld [vmem:[%s6255_s2 + $0x44c] ss:$16 sps:$4 sm:$0xff]  }
  0x57   :  { %1308 = vmatpush1.bf16.msra.mxu0 %v4279_v31  ;;  %v4363_v31 = vld [vmem:[%s6255_s2 + $0x460] ss:$16 sps:$4 sm:$0xff]  }
  0x58   :  { %1470 = vmatpush1.bf16.msra.mxu1 %v4282_v32  ;;  %1309 = vmatprep.subr.bf16.mxu0 %v4287_v33  ;;  %v4366_v32 = vld [vmem:[%s6255_s2 + $0x448] ss:$16 sps:$4 sm:$0xff]   ;;  %v4371_v33 = vld [vmem:[%s6255_s2 + $0x484] ss:$16 sps:$4 sm:$0xff]  }
  0x59   :  { %1471 = vmatprep.subr.bf16.mxu1 %v4290_v34  ;;  %v4374_v34 = vld [vmem:[%s6255_s2 + $0x46c] ss:$16 sps:$4 sm:$0xff]  }
  0x5b   :  { %1310 = vmatpush1.bf16.msra.mxu0 %v4285_v36  ;;  %v4372_v36 = vld [vmem:[%s6255_s2 + $0x468] ss:$16 sps:$4 sm:$0xff]  }
  0x5c   :  { %1472 = vmatpush1.bf16.msra.mxu1 %v4288_v38  ;;  %1311 = vmatprep.subr.bf16.mxu0 %v4293_v39  ;;  %v4380_v38 = vld [vmem:[%s6255_s2 + $0x48c] ss:$16 sps:$4 sm:$0xff]   ;;  %v4375_v39 = vld [vmem:[%s6255_s2 + $0x4a0] ss:$16 sps:$4 sm:$0xff]  }
  0x5d   :  { %1473 = vmatprep.subr.bf16.mxu1 %v4296_v40  ;;  %v4378_v40 = vld [vmem:[%s6255_s2 + $0x488] ss:$16 sps:$4 sm:$0xff]  }
  0x5f   :  { %1312 = vmatpush1.bf16.msra.mxu0 %v4291_v41  ;;  %v4383_v41 = vld [vmem:[%s6255_s2 + $0x4c4] ss:$16 sps:$4 sm:$0xff]  }
  0x60   :  { %1474 = vmatpush1.bf16.msra.mxu1 %v4294_v42  ;;  %1313 = vmatprep.subr.bf16.mxu0 %v4299_v43  ;;  %v4386_v42 = vld [vmem:[%s6255_s2 + $0x4ac] ss:$16 sps:$4 sm:$0xff]   ;;  %v4381_v43 = vld [vmem:[%s6255_s2 + $0x4c0] ss:$16 sps:$4 sm:$0xff]  }
  0x61   :  { %1475 = vmatprep.subr.bf16.mxu1 %v4302_v44  ;;  %v4384_v44 = vld [vmem:[%s6255_s2 + $0x4a8] ss:$16 sps:$4 sm:$0xff]  }
  0x63   :  { %1314 = vmatpush1.bf16.msra.mxu0 %v4297_v45  ;;  %v4389_v45 = vld [vmem:[%s6255_s2 + $0x4e4] ss:$16 sps:$4 sm:$0xff]  }
  0x64   :  { %1476 = vmatpush1.bf16.msra.mxu1 %v4300_v46  ;;  %1315 = vmatprep.subr.bf16.mxu0 %v4305_v47  ;;  %v4392_v46 = vld [vmem:[%s6255_s2 + $0x4cc] ss:$16 sps:$4 sm:$0xff]   ;;  %v4387_v47 = vld [vmem:[%s6255_s2 + $0x4e0] ss:$16 sps:$4 sm:$0xff]  }
  0x65   :  { %1477 = vmatprep.subr.bf16.mxu1 %v4308_v48  ;;  %v4390_v48 = vld [vmem:[%s6255_s2 + $0x4c8] ss:$16 sps:$4 sm:$0xff]  }
  0x67   :  { %1316 = vmatpush1.bf16.msra.mxu0 %v4303_v49  ;;  %v4395_v49 = vld [vmem:[%s6255_s2 + $0x504] ss:$16 sps:$4 sm:$0xff]  }
  0x68   :  { %1478 = vmatpush1.bf16.msra.mxu1 %v4306_v50  ;;  %1317 = vmatprep.subr.bf16.mxu0 %v4311_v51  ;;  %v4398_v50 = vld [vmem:[%s6255_s2 + $0x4ec] ss:$16 sps:$4 sm:$0xff]   ;;  %v4393_v51 = vld [vmem:[%s6255_s2 + $0x500] ss:$16 sps:$4 sm:$0xff]  }
  0x69   :  { %1479 = vmatprep.subr.bf16.mxu1 %v4314_v52  ;;  %v4396_v52 = vld [vmem:[%s6255_s2 + $0x4e8] ss:$16 sps:$4 sm:$0xff]  }
  0x6b   :  { %1318 = vmatpush1.bf16.msra.mxu0 %v4309_v53  ;;  %v4401_v53 = vld [vmem:[%s6255_s2 + $0x524] ss:$16 sps:$4 sm:$0xff]  }
  0x6c   :  { %1480 = vmatpush1.bf16.msra.mxu1 %v4312_v54  ;;  %1319 = vmatprep.subr.bf16.mxu0 %v4317_v55  ;;  %v4404_v54 = vld [vmem:[%s6255_s2 + $0x50c] ss:$16 sps:$4 sm:$0xff]   ;;  %v4399_v55 = vld [vmem:[%s6255_s2 + $0x520] ss:$16 sps:$4 sm:$0xff]  }
  0x6d   :  { %1481 = vmatprep.subr.bf16.mxu1 %v4320_v56  ;;  %v4402_v56 = vld [vmem:[%s6255_s2 + $0x508] ss:$16 sps:$4 sm:$0xff]  }
  0x6f   :  { %1320 = vmatpush1.bf16.msra.mxu0 %v4315_v57  ;;  %v4407_v57 = vld [vmem:[%s6255_s2 + $0x544] ss:$16 sps:$4 sm:$0xff]  }
  0x70   :  { %1482 = vmatpush1.bf16.msra.mxu1 %v4318_v58  ;;  %1321 = vmatprep.subr.bf16.mxu0 %v4323_v59  ;;  %v4410_v58 = vld [vmem:[%s6255_s2 + $0x52c] ss:$16 sps:$4 sm:$0xff]   ;;  %v4405_v59 = vld [vmem:[%s6255_s2 + $0x540] ss:$16 sps:$4 sm:$0xff]  }
  0x71   :  { %1483 = vmatprep.subr.bf16.mxu1 %v4326_v60  ;;  %v4408_v60 = vld [vmem:[%s6255_s2 + $0x528] ss:$16 sps:$4 sm:$0xff]  }
  0x73   :  { %1322 = vmatpush1.bf16.msra.mxu0 %v4321_v61  ;;  %v4413_v61 = vld [vmem:[%s6255_s2 + $0x564] ss:$16 sps:$4 sm:$0xff]  }
  0x74   :  { %1484 = vmatpush1.bf16.msra.mxu1 %v4324_v62  ;;  %1323 = vmatprep.subr.bf16.mxu0 %v4329_v63  ;;  %v4416_v62 = vld [vmem:[%s6255_s2 + $0x54c] ss:$16 sps:$4 sm:$0xff]   ;;  %v4411_v63 = vld [vmem:[%s6255_s2 + $0x560] ss:$16 sps:$4 sm:$0xff]  }
  0x75   :  { %1485 = vmatprep.subr.bf16.mxu1 %v4332_v0  ;;  %v4414_v0 = vld [vmem:[%s6255_s2 + $0x548] ss:$16 sps:$4 sm:$0xff]  }
  0x77   :  { %1324 = vmatpush1.bf16.msra.mxu0 %v4327_v1  ;;  %v4419_v1 = vld [vmem:[%s6255_s2 + $0x584] ss:$16 sps:$4 sm:$0xff]  }
  0x78   :  { %1486 = vmatpush1.bf16.msra.mxu1 %v4330_v3  ;;  %1325 = vmatprep.subr.bf16.mxu0 %v4335_v4  ;;  %v4422_v3 = vld [vmem:[%s6255_s2 + $0x56c] ss:$16 sps:$4 sm:$0xff]   ;;  %v4417_v4 = vld [vmem:[%s6255_s2 + $0x580] ss:$16 sps:$4 sm:$0xff]  }
  0x79   :  { %1487 = vmatprep.subr.bf16.mxu1 %v4338_v5  ;;  %v4420_v5 = vld [vmem:[%s6255_s2 + $0x568] ss:$16 sps:$4 sm:$0xff]  }
  0x7b   :  { %1326 = vmatpush1.bf16.msra.mxu0 %v4333_v6  ;;  %v4425_v6 = vld [vmem:[%s6255_s2 + $0x5a4] ss:$16 sps:$4 sm:$0xff]  }
  0x7c   :  { %1488 = vmatpush1.bf16.msra.mxu1 %v4336_v8  ;;  %1327 = vmatprep.subr.bf16.mxu0 %v4341_v9  ;;  %v4428_v8 = vld [vmem:[%s6255_s2 + $0x58c] ss:$16 sps:$4 sm:$0xff]   ;;  %v4423_v9 = vld [vmem:[%s6255_s2 + $0x5a0] ss:$16 sps:$4 sm:$0xff]  }
  0x7d   :  { %1489 = vmatprep.subr.bf16.mxu1 %v4344_v10  ;;  %v4426_v10 = vld [vmem:[%s6255_s2 + $0x588] ss:$16 sps:$4 sm:$0xff]  }
  0x7f   :  { %1328 = vmatpush1.bf16.msra.mxu0 %v4339_v11  ;;  %v4431_v11 = vld [vmem:[%s6255_s2 + $0x5c4] ss:$16 sps:$4 sm:$0xff]  }
  0x80   :  { %1490 = vmatpush1.bf16.msra.mxu1 %v4342_v12  ;;  %1338 = vmatprep.subr.bf16.mxu0 %v4347_v14  ;;  %v4434_v12 = vld [vmem:[%s6255_s2 + $0x5ac] ss:$16 sps:$4 sm:$0xff]   ;;  %v4432_v14 = vld [vmem:[%s6255_s2 + $0x5a8] ss:$16 sps:$4 sm:$0xff]  }
  0x81   :  { %1491 = vmatprep.subr.bf16.mxu1 %v4350_v15  ;;  %v4437_v15 = vld [vmem:[%s6255_s2 + $0x5e4] ss:$16 sps:$4 sm:$0xff]  }
  0x82   :  { %1330 = vmatmul.mubr.bf16.vlgmr.msra.gmra.mrb[0].mxu0 %v49_v17 }
  0x83   :  { %1339 = vmatpush1.bf16.msra.mxu0 %v4345_v16  ;;  %1370 = vmatprep.mubr.bf16.mxu0 %v52_v22  ;;  %v4440_v16 = vld [vmem:[%s6255_s2 + $0x5cc] ss:$16 sps:$4 sm:$0xff]  }
  0x84   :  { %1492 = vmatpush1.bf16.msra.mxu1 %v4348_v18  ;;  %1340 = vmatprep.subr.bf16.mxu0 %v4353_v19  ;;  %v4438_v18 = vld [vmem:[%s6255_s2 + $0x5c8] ss:$16 sps:$4 sm:$0xff]   ;;  %v44_v19 = vld [vmem:[%s6253_s0 + $0x20] sm:$0xff] }
  0x85   :  { %1502 = vmatprep.subr.bf16.mxu1 %v4356_v20  ;;  %v4443_v20 = vld [vmem:[%s6255_s2 + $0x5ec] ss:$16 sps:$4 sm:$0xff]  }
  0x87   :  { %1494 = vmatmul.mubr.bf16.vlgmr.msra.gmra.mrb[4].mxu1 %v49_v17  ;;  %1341 = vmatpush1.bf16.msra.mxu0 %v4351_v23  ;;  %v4435_v17 = vld [vmem:[%s6255_s2 + $0x5e0] ss:$16 sps:$4 sm:$0xff]  }
  0x88   :  { %1503 = vmatpush1.bf16.msra.mxu1 %v4354_v24  ;;  %1342 = vmatprep.subr.bf16.mxu0 %v4359_v25  ;;  %v4448_v23 = vld [vmem:[%s6257_s4] sm:$0xff]   ;;  %v51_v24 = vpack.c.bf16 %v44_v19, %v44_v19  ;;  %v4446_v25 = vld [vmem:[%s6255_s2 + $0x60c] ss:$16 sps:$4 sm:$0xff]  }
  0x89   :  { %1504 = vmatprep.subr.bf16.mxu1 %v4362_v26  ;;  %1534 = vmatprep.mubr.bf16.mxu1 %v52_v22  ;;  %v4441_v22 = vld [vmem:[%s6255_s2 + $0x5e8] ss:$16 sps:$4 sm:$0xff]  }
  0x8a   :  { %v4449_v26 = vld [vmem:[%s6257_s4 + $0x48] sm:$0xff]  }
  0x8b   :  { %1343 = vmatpush1.bf16.msra.mxu0 %v4357_v27  ;;  %v4444_v27 = vld [vmem:[%s6255_s2 + $0x608] ss:$16 sps:$4 sm:$0xff]  }
  0x8c   :  { %1505 = vmatpush1.bf16.msra.mxu1 %v4360_v28  ;;  %1344 = vmatprep.subr.bf16.mxu0 %v4365_v29  ;;  %v4450_v28 = vld [vmem:[%s6257_s4 + $0x8] sm:$0xff]   ;;  %v4451_v29 = vld [vmem:[%s6257_s4 + $0x50] sm:$0xff]  }
  0x8d   :  { %1506 = vmatprep.subr.bf16.mxu1 %v4368_v30  ;;  %v4452_v30 = vld [vmem:[%s6257_s4 + $0x10] sm:$0xff]  }
  0x8f   :  { %1345 = vmatpush1.bf16.msra.mxu0 %v4363_v31  ;;  %v4454_v31 = vld [vmem:[%s6257_s4 + $0x58] sm:$0xff]  }
  0x90   :  { %1507 = vmatpush1.bf16.msra.mxu1 %v4366_v32  ;;  %1346 = vmatprep.subr.bf16.mxu0 %v4371_v33  ;;  %v4455_v32 = vld [vmem:[%s6257_s4 + $0x18] sm:$0xff]   ;;  %v4457_v33 = vld [vmem:[%s6257_s4 + $0x60] sm:$0xff]  }
  0x91   :  { %1508 = vmatprep.subr.bf16.mxu1 %v4374_v34  ;;  %v4453_v34 = vld [vmem:[%s6257_s4 + $0x80] sm:$0xff]  }
  0x93   :  { %1347 = vmatpush1.bf16.msra.mxu0 %v4369_v35  ;;  %v4458_v35 = vld [vmem:[%s6257_s4 + $0x20] sm:$0xff]  }
  0x94   :  { %1509 = vmatpush1.bf16.msra.mxu1 %v4372_v36  ;;  %1348 = vmatprep.subr.bf16.mxu0 %v4377_v37  ;;  %v4460_v36 = vld [vmem:[%s6257_s4 + $0x68] sm:$0xff]  }
  0x95   :  { %1510 = vmatprep.subr.bf16.mxu1 %v4380_v38  ;;  %v4456_v37 = vld [vmem:[%s6257_s4 + $0x88] sm:$0xff]   ;;  %v4459_v38 = vld [vmem:[%s6257_s4 + $0x90] sm:$0xff]  }
  0x97   :  { %1349 = vmatpush1.bf16.msra.mxu0 %v4375_v39 }
  0x98   :  { %1511 = vmatpush1.bf16.msra.mxu1 %v4378_v40  ;;  %1350 = vmatprep.subr.bf16.mxu0 %v4383_v41 }
  0x99   :  { %1512 = vmatprep.subr.bf16.mxu1 %v4386_v42 }
  0x9b   :  { %1351 = vmatpush1.bf16.msra.mxu0 %v4381_v43 }
  0x9c   :  { %1513 = vmatpush1.bf16.msra.mxu1 %v4384_v44  ;;  %1352 = vmatprep.subr.bf16.mxu0 %v4389_v45 }
  0x9d   :  { %1514 = vmatprep.subr.bf16.mxu1 %v4392_v46 }
  0x9f   :  { %1353 = vmatpush1.bf16.msra.mxu0 %v4387_v47 }
  0xa0   :  { %1515 = vmatpush1.bf16.msra.mxu1 %v4390_v48  ;;  %1354 = vmatprep.subr.bf16.mxu0 %v4395_v49 }
  0xa1   :  { %1516 = vmatprep.subr.bf16.mxu1 %v4398_v50 }
  0xa3   :  { %1355 = vmatpush1.bf16.msra.mxu0 %v4393_v51 }
  0xa4   :  { %1517 = vmatpush1.bf16.msra.mxu1 %v4396_v52  ;;  %1356 = vmatprep.subr.bf16.mxu0 %v4401_v53 }
  0xa5   :  { %1518 = vmatprep.subr.bf16.mxu1 %v4404_v54 }
  0xa7   :  { %1357 = vmatpush1.bf16.msra.mxu0 %v4399_v55 }
  0xa8   :  { %1519 = vmatpush1.bf16.msra.mxu1 %v4402_v56  ;;  %1358 = vmatprep.subr.bf16.mxu0 %v4407_v57 }
  0xa9   :  { %1520 = vmatprep.subr.bf16.mxu1 %v4410_v58 }
  0xab   :  { %1359 = vmatpush1.bf16.msra.mxu0 %v4405_v59 }
  0xac   :  { %1521 = vmatpush1.bf16.msra.mxu1 %v4408_v60  ;;  %1360 = vmatprep.subr.bf16.mxu0 %v4413_v61 }
  0xad   :  { %1522 = vmatprep.subr.bf16.mxu1 %v4416_v62 }
  0xaf   :  { %1361 = vmatpush1.bf16.msra.mxu0 %v4411_v63 }
  0xb0   :  { %1523 = vmatpush1.bf16.msra.mxu1 %v4414_v0  ;;  %1362 = vmatprep.subr.bf16.mxu0 %v4419_v1 }
  0xb1   :  { %1524 = vmatprep.subr.bf16.mxu1 %v4422_v3 }
  0xb3   :  { %1363 = vmatpush1.bf16.msra.mxu0 %v4417_v4 }
  0xb4   :  { %1525 = vmatpush1.bf16.msra.mxu1 %v4420_v5  ;;  %1364 = vmatprep.subr.bf16.mxu0 %v4425_v6 }
  0xb5   :  { %1526 = vmatprep.subr.bf16.mxu1 %v4428_v8 }
  0xb7   :  { %1365 = vmatpush1.bf16.msra.mxu0 %v4423_v9 }
  0xb8   :  { %1527 = vmatpush1.bf16.msra.mxu1 %v4426_v10  ;;  %1366 = vmatprep.subr.bf16.mxu0 %v4431_v11 }
  0xb9   :  { %1528 = vmatprep.subr.bf16.mxu1 %v4434_v12 }
  0xbb   :  { %1367 = vmatpush1.bf16.msra.mxu0 %v4429_v13 }
  0xbc   :  { %1529 = vmatpush1.bf16.msra.mxu1 %v4432_v14  ;;  %1368 = vmatprep.subr.bf16.mxu0 %v4437_v15 }
  0xbd   :  { %1530 = vmatprep.subr.bf16.mxu1 %v4440_v16 }
  0xbf   :  { %1369 = vmatpush1.bf16.msra.mxu0 %v4435_v17 }
  0xc0   :  { %1531 = vmatpush1.bf16.msra.mxu1 %v4438_v18  ;;  %4061 = vmatprep.subr.bf16.mxu0 %v4447_v21 }
  0xc1   :  { %1532 = vmatprep.subr.bf16.mxu1 %v4443_v20 }
  0xc2   :  { %1371 = vmatmul.mubr.bf16.vlgmr.msra.gmra.mrb[0].mxu0 %v51_v24 }
  0xc3   :  { %4062 = vmatpush3.bf16.msra.mxu0 %v4448_v23 }
  0xc4   :  { %1533 = vmatpush1.bf16.msra.mxu1 %v4441_v22  ;;  %4063 = vmatprep.subr.bf16.mxu0 %v4449_v26 }
  0xc5   :  { %1543 = vmatprep.subr.bf16.mxu1 %v4446_v25 }
  0xc7   :  { %1535 = vmatmul.mubr.bf16.vlgmr.msra.gmra.mrb[4].mxu1 %v51_v24  ;;  %4064 = vmatpush3.bf16.msra.mxu0 %v4450_v28 }
  0xc8   :  { %1544 = vmatpush1.bf16.msra.mxu1 %v4444_v27  ;;  %1575 = vmatprep.mubr.bf16.mxu1 %v4810_v2 }
  0xc9   :  { %1842 = vmatprep.subr.bf16.mxu1 %v4810_v2  ;;  %4065 = vmatprep.subr.bf16.mxu0 %v4451_v29 }
  0xcb   :  { %4066 = vmatpush3.bf16.msra.mxu0 %v4452_v30 }
  0xcc   :  { %4067 = vmatprep.subr.bf16.mxu0 %v4454_v31 }
  0xcf   :  { %4068 = vmatpush3.bf16.msra.mxu0 %v4455_v32 }
  0xd0   :  { %4069 = vmatprep.subr.bf16.mxu0 %v4457_v33 }
  0xd3   :  { %3827 = vmatmul.mubr.msk.bf16.vlgmr.msra.gmra.mrb[4].mxu1 %vm1252_vm0, %v4893_v7  ;;  %4070 = vmatpush3.bf16.msra.mxu0 %v4458_v35 }
  0xd4   :  { %1843 = vmatpush1.bf16.msra.mxu1 %v4453_v34  ;;  %4071 = vmatprep.subr.bf16.mxu0 %v4460_v36 }
  0xd5   :  { %1844 = vmatprep.subr.bf16.mxu1 %v4810_v2 }
  0xd8   :  { %1845 = vmatpush1.bf16.msra.mxu1 %v4456_v37 }
  0xd9   :  { %1846 = vmatprep.subr.bf16.mxu1 %v4810_v2 }
  0xda   :  { %v1413_v39 = vpop.f32.mrb[0].mxu1 }
  0xdb   :  { %v1415_v40 = vpop.f32.mrb[1].mxu1 }
  0xdc   :  { %v1417_v41 = vpop.f32.mrb[2].mxu1  ;;  %1847 = vmatpush1.bf16.msra.mxu1 %v4459_v38 }
  0xdd   :  { %v1418_v42 = vpop.f32.mrb[3].mxu1  ;;  %1848 = vmatprep.subr.bf16.mxu1 %v4810_v2 }
  0xde   :  { %18 = vsyncpa [#allocation5], 0  ;;  %v4461_v7 = vld [vmem:[%s6257_s4 + $0x28] sm:$0xff]   ;;  %v4462_v43 = vld [vmem:[%s6257_s4 + $0x98] sm:$0xff]   ;;  %v252_v53 = vlaneseq  ;;  %vm3600_vm1 = vcmask 326656   ;;  %vm1955_vm2 = vcmask 1041408  }
  0xdf   :  { %4072 = vmatpush3.bf16.msra.mxu0 %v4461_v7  ;;  %v4463_v44 = vld [vmem:[%s6257_s4 + $0x70] sm:$0xff]   ;;  %v4465_v46 = vld [vmem:[%s6257_s4 + $0xa0] sm:$0xff]   ;;  %v4466_v47 = vld [vmem:[%s6257_s4 + $0x78] sm:$0xff]   ;;  %s4811_s20 = smov 108   ;;  %vm1951_vm3 = vcmask 162816  }
  0xe0   :  { %1849 = vmatpush1.bf16.msra.mxu1 %v4462_v43  ;;  %v4464_v45 = vld [vmem:[%s6257_s4 + $0x30] sm:$0xff]   ;;  %4073 = vmatprep.subr.bf16.mxu0 %v4463_v44  ;;  %v4467_v48 = vld [vmem:[%s6257_s4 + $0x38] sm:$0xff]   ;;  %v4468_v49 = vld [vmem:[%s6257_s4 + $0xa8] sm:$0xff]   ;;  %v5575_v54 = vshrl.u32 %v252_v53, 7 }
  0xe1   :  { %1850 = vmatprep.subr.bf16.mxu1 %v4810_v2  ;;  %v4469_v50 = vld [vmem:[%s6257_s4 + $0xb0] sm:$0xff]   ;;  %v4470_v51 = vld [vmem:[%s6257_s4 + $0xb8] sm:$0xff]   ;;  %v4471_v52 = vld [vmem:[%s6257_s4 + $0xc0] sm:$0xff]  }
  0xe2   :  { %v5578_v55 = vsub.s32 0, %v5575_v54  ;;  %v250_v56 = vld [vmem:[%s6256_s3] sm:$0xf]  ;;  %v5584_v57 = vsub.s32 1, %v5575_v54  ;;  %v5589_v10 = vsub.s32 2, %v5575_v54  ;;  %v5592_v11 = vsub.s32 3, %v5575_v54 }
  0xe3   :  { %4074 = vmatpush3.bf16.msra.mxu0 %v4464_v45  ;;  %v4472_v24 = vld [vmem:[%s6259_s6] ss:$16 sps:$4 sm:$0xff]   ;;  %v4474_v25 = vld [vmem:[%s6259_s6 + $0x4] ss:$16 sps:$4 sm:$0xff]   ;;  %v4479_v43 = vld [vmem:[%s6259_s6 + $0xc] ss:$16 sps:$4 sm:$0xff]  }
  0xe4   :  { %1851 = vmatpush1.bf16.msra.mxu1 %v4465_v46  ;;  %4075 = vmatprep.subr.bf16.mxu0 %v4466_v47  ;;  %v255_v58 = vrot.slane %v250_v56, %v5578_v55  ;;  %v259_v59 = vrot.slane %v250_v56, %v5584_v57  ;;  %v263_v12 = vrot.slane %v250_v56, %v5589_v10  ;;  %v3828_v31 = vld [vmem:[%s6258_s5] ss:$0 sm:$0xff]  ;;  %v4490_v47 = vld [vmem:[%s6261_s8 + $0x3c] ss:$28 sps:$4 sm:$0xff]  }
  0xe5   :  { %1852 = vmatprep.subr.bf16.mxu1 %v4810_v2  ;;  %v267_v13 = vrot.slane %v250_v56, %v5592_v11  ;;  %v4482_v45 = vld [vmem:[%s6261_s8] ss:$28 sps:$4 sm:$0xff]  }
  0xe6   :  { %v4484_v46 = vld [vmem:[%s6261_s8 + $0x4] ss:$28 sps:$4 sm:$0xff]  }
  0xe7   :  { %4076 = vmatpush3.bf16.msra.mxu0 %v4467_v48  ;;  %v4488_v48 = vld [vmem:[%s6261_s8 + $0x38] ss:$28 sps:$4 sm:$0xff]   ;;  %v4508_v53 = vld [vmem:[%s6261_s8 + $0xe4] ss:$28 sps:$4 sm:$0xff]  }
  0xe8   :  { %1853 = vmatpush1.bf16.msra.mxu1 %v4468_v49  ;;  %3198 = vmatprep.subr.bf16.mxu0 %v4484_v46  ;;  %v4496_v49 = vld [vmem:[%s6261_s8 + $0x74] ss:$28 sps:$4 sm:$0xff]   ;;  %v4506_v56 = vld [vmem:[%s6261_s8 + $0xe0] ss:$28 sps:$4 sm:$0xff]  }
  0xe9   :  { %1854 = vmatprep.subr.bf16.mxu1 %v4810_v2  ;;  %v4545_v46 = vld [vmem:[%s6261_s8 + $0x238] ss:$28 sps:$4 sm:$0xff]  }
  0xec   :  { %1855 = vmatpush1.bf16.msra.mxu1 %v4469_v50  ;;  %v4494_v50 = vld [vmem:[%s6261_s8 + $0x70] ss:$28 sps:$4 sm:$0xff]  }
  0xed   :  { %1856 = vmatprep.subr.bf16.mxu1 %v4810_v2 }
  0xf0   :  { %1857 = vmatpush1.bf16.msra.mxu1 %v4470_v51  ;;  %v4502_v51 = vld [vmem:[%s6261_s8 + $0xac] ss:$28 sps:$4 sm:$0xff]  }
  0xf1   :  { %1858 = vmatprep.subr.bf16.mxu1 %v4810_v2 }
  0xf4   :  { %1859 = vmatpush1.bf16.msra.mxu1 %v4471_v52  ;;  %v4500_v52 = vld [vmem:[%s6261_s8 + $0xa8] ss:$28 sps:$4 sm:$0xff]  }
  0xf5   :  { %1968 = vmatprep.subr.bf16.mxu1 %v4474_v25 }
 0x195   :  { %v1372_v60 = vpop.f32.mrb[0].mxu0 }
 0x196   :  { %v4105_v61 = vadd.f32 %v1372_v60, %v255_v58  ;;  %v1374_v62 = vpop.f32.mrb[1].mxu0  ;;  %v4514_v58 = vld [vmem:[%s6261_s8 + $0x11c] ss:$28 sps:$4 sm:$0xff]   ;;  %v4520_v60 = vld [vmem:[%s6261_s8 + $0x154] ss:$28 sps:$4 sm:$0xff]  }
 0x197   :  { %v4107_v63 = vadd.f32 %v1374_v62, %v259_v59  ;;  %v1376_v0 = vpop.f32.mrb[2].mxu0  ;;  %v4512_v59 = vld [vmem:[%s6261_s8 + $0x118] ss:$28 sps:$4 sm:$0xff]   ;;  %v4526_v62 = vld [vmem:[%s6261_s8 + $0x18c] ss:$28 sps:$4 sm:$0xff]  }
 0x198   :  { %v4106_v1 = vadd.f32 %v4105_v61, %v1413_v39  ;;  %v1377_v3 = vpop.f32.mrb[3].mxu0  ;;  %v1897_v39 = vld [vmem:[%s6259_s6 + $0x20] sm:$0x33]  ;;  %v4518_v61 = vld [vmem:[%s6261_s8 + $0x150] ss:$28 sps:$4 sm:$0xff]  }
 0x199   :  { %v4108_v4 = vadd.f32 %v4107_v63, %v1415_v40  ;;  %v3860_v41 = vcombine.high %v1897_v39, %v1897_v39  ;;  %v3859_v42 = vcombine.low %v1897_v39, %v1897_v39  ;;  %v4524_v63 = vld [vmem:[%s6261_s8 + $0x188] ss:$28 sps:$4 sm:$0xff]   ;;  %v4538_v3 = vld [vmem:[%s6261_s8 + $0x1fc] ss:$28 sps:$4 sm:$0xff]  }
 0x19a   :  { %v1584_v5 = vmax.f32 %v4106_v1, 0.0  ;;  %v4532_v0 = vld [vmem:[%s6261_s8 + $0x1c4] ss:$28 sps:$4 sm:$0xff]   ;;  %v4521_v39 = vld [vmem:[%s6261_s8 + $0x158] ss:$28 sps:$4 sm:$0xff]  }
 0x19b   :  { %v1585_v6 = vmax.f32 %v4108_v4, 0.0  ;;  %v1957_v7 = vsel %vm1955_vm2, %v3859_v42, 0  ;;  %v4530_v1 = vld [vmem:[%s6261_s8 + $0x1c0] ss:$28 sps:$4 sm:$0xff]   ;;  %v4536_v4 = vld [vmem:[%s6261_s8 + $0x1f8] ss:$28 sps:$4 sm:$0xff]  }
 0x19c   :  { %v1588_v9 = vpack.c.bf16 %v1584_v5, %v1584_v5  ;;  %v4544_v5 = vld [vmem:[%s6261_s8 + $0x234] ss:$28 sps:$4 sm:$0xff]   ;;  %v4535_v42 = vld [vmem:[%s6261_s8 + $0x1cc] ss:$28 sps:$4 sm:$0xff]  }
 0x19d   :  { %v1589_v8 = vpack.c.bf16 %v1585_v6, %v1585_v6  ;;  %v4542_v6 = vld [vmem:[%s6261_s8 + $0x230] ss:$28 sps:$4 sm:$0xff]  }
 0x19f   :  { %1834 = vmatprep.mubr.bf16.mxu0 %v1589_v8  ;;  %v4550_v8 = vld [vmem:[%s6261_s8 + $0x26c] ss:$28 sps:$4 sm:$0xff]  }
 0x1a0   :  { %1835 = vmatmul.mubr.bf16.vlgmr.msra.gmra.mrb[4].mxu0 %v1588_v9  ;;  %v4548_v9 = vld [vmem:[%s6261_s8 + $0x268] ss:$28 sps:$4 sm:$0xff]  }
 0x1a1   :  { %3199 = vmatpush1.bf16.msra.mxu0 %v4482_v45  ;;  %v4547_v45 = vld [vmem:[%s6261_s8 + $0x23c] ss:$28 sps:$4 sm:$0xff]  }
 0x1a2   :  { %3200 = vmatprep.subr.bf16.mxu0 %v4490_v47  ;;  %v4553_v47 = vld [vmem:[%s6261_s8 + $0x274] ss:$28 sps:$4 sm:$0xff]  }
 0x1a5   :  { %3201 = vmatpush1.bf16.msra.mxu0 %v4488_v48  ;;  %v4551_v48 = vld [vmem:[%s6261_s8 + $0x270] ss:$28 sps:$4 sm:$0xff]  }
 0x1a6   :  { %v1577_v14 = vpop.f32.mrb[4].mxu1  ;;  %3202 = vmatprep.subr.bf16.mxu0 %v4496_v49  ;;  %v4559_v49 = vld [vmem:[%s6261_s8 + $0x2ac] ss:$28 sps:$4 sm:$0xff]  }
 0x1a7   :  { %v4109_v15 = vadd.f32 %v1577_v14, %v263_v12  ;;  %v1579_v16 = vpop.f32.mrb[5].mxu1  ;;  %v4556_v12 = vld [vmem:[%s6261_s8 + $0x2a4] ss:$28 sps:$4 sm:$0xff]   ;;  %v4562_v14 = vld [vmem:[%s6261_s8 + $0x2dc] ss:$28 sps:$4 sm:$0xff]  }
 0x1a8   :  { %v4110_v17 = vadd.f32 %v1579_v16, %v267_v13  ;;  %v1581_v18 = vpop.f32.mrb[6].mxu1  ;;  %v4554_v13 = vld [vmem:[%s6261_s8 + $0x2a0] ss:$28 sps:$4 sm:$0xff]  }
 0x1a9   :  { %v1586_v19 = vmax.f32 %v4109_v15, 0.0  ;;  %v1582_v20 = vpop.f32.mrb[7].mxu1  ;;  %3203 = vmatpush1.bf16.msra.mxu0 %v4494_v50  ;;  %v4560_v15 = vld [vmem:[%s6261_s8 + $0x2d8] ss:$28 sps:$4 sm:$0xff]   ;;  %v1882_v16 = vld [vmem:[%s6254_s1] sm:$0xff] }
 0x1aa   :  { %v1587_v21 = vmax.f32 %v4110_v17, 0.0  ;;  %3204 = vmatprep.subr.bf16.mxu0 %v4502_v51  ;;  %v4557_v50 = vld [vmem:[%s6261_s8 + $0x2a8] ss:$28 sps:$4 sm:$0xff]  }
 0x1ab   :  { %v1590_v23 = vpack.c.bf16 %v1586_v19, %v1586_v19  ;;  %v1898_v19 = vld [vmem:[%s6259_s6 + $0x28] sm:$0x33]  ;;  %v4565_v51 = vld [vmem:[%s6261_s8 + $0x2e4] ss:$28 sps:$4 sm:$0xff]  }
 0x1ac   :  { %v1591_v22 = vpack.c.bf16 %v1587_v21, %v1587_v21  ;;  %v4477_v21 = vld [vmem:[%s6259_s6 + $0x8] ss:$16 sps:$4 sm:$0xff]  }
 0x1ad   :  { %3205 = vmatpush1.bf16.msra.mxu0 %v4500_v52  ;;  %v4563_v52 = vld [vmem:[%s6261_s8 + $0x2e0] ss:$28 sps:$4 sm:$0xff]  }
 0x1ae   :  { %3854 = vmatprep.mubr.msk.bf16.mxu1 %vm1252_vm0, %v1591_v22  ;;  %3206 = vmatprep.subr.bf16.mxu0 %v4508_v53  ;;  %v4568_v53 = vld [vmem:[%s6261_s8 + $0x314] ss:$28 sps:$4 sm:$0xff]  }
 0x1af   :  { %1875 = vmatmul.mubr.bf16.vlgmr.msra.gmra.mrb[8].mxu1 %v1590_v23  ;;  %v3862_v23 = vcombine.high %v1898_v19, %v1898_v19 }
 0x1b0   :  { %2000 = vmatprep.mubr.bf16.mxu1 %v4810_v2  ;;  %1969 = vmatpush1.bf16.msra.mxu1 %v4472_v24  ;;  %v3861_v24 = vcombine.low %v1898_v19, %v1898_v19  ;;  %v4581_v19 = vld [vmem:[%s6261_s8 + $0x388] ss:$28 sps:$4 sm:$0xff]  }
 0x1b1   :  { %3863 = vmatprep.subr.msk.bf16.mxu1 %vm1955_vm2, %v3860_v41  ;;  %3207 = vmatpush1.bf16.msra.mxu0 %v4506_v56  ;;  %v4527_v41 = vld [vmem:[%s6261_s8 + $0x190] ss:$28 sps:$4 sm:$0xff]   ;;  %v4571_v56 = vld [vmem:[%s6261_s8 + $0x31c] ss:$28 sps:$4 sm:$0xff]  }
 0x1b2   :  { %3208 = vmatprep.subr.bf16.mxu0 %v4514_v58  ;;  %v1963_v25 = vsel %vm1955_vm2, %v3861_v24, 0  ;;  %v4566_v58 = vld [vmem:[%s6261_s8 + $0x310] ss:$28 sps:$4 sm:$0xff]  }
 0x1b4   :  { %1971 = vmatpush1.bf16.msra.mxu1 %v1957_v7  ;;  %v4533_v7 = vld [vmem:[%s6261_s8 + $0x1c8] ss:$28 sps:$4 sm:$0xff]  }
 0x1b5   :  { %2009 = vmatprep.subr.bf16.mxu1 %v4479_v43  ;;  %3209 = vmatpush1.bf16.msra.mxu0 %v4512_v59  ;;  %v4541_v43 = vld [vmem:[%s6261_s8 + $0x204] ss:$28 sps:$4 sm:$0xff]   ;;  %v4569_v59 = vld [vmem:[%s6261_s8 + $0x318] ss:$28 sps:$4 sm:$0xff]  }
 0x1b6   :  { %3210 = vmatprep.subr.bf16.mxu0 %v4520_v60  ;;  %v4574_v60 = vld [vmem:[%s6261_s8 + $0x34c] ss:$28 sps:$4 sm:$0xff]  }
 0x1b9   :  { %3211 = vmatpush1.bf16.msra.mxu0 %v4518_v61  ;;  %v4577_v61 = vld [vmem:[%s6261_s8 + $0x354] ss:$28 sps:$4 sm:$0xff]  }
 0x1ba   :  { %3212 = vmatprep.subr.bf16.mxu0 %v4526_v62  ;;  %v4572_v62 = vld [vmem:[%s6261_s8 + $0x348] ss:$28 sps:$4 sm:$0xff]  }
 0x1bd   :  { %3213 = vmatpush1.bf16.msra.mxu0 %v4524_v63  ;;  %v4575_v63 = vld [vmem:[%s6261_s8 + $0x350] ss:$28 sps:$4 sm:$0xff]  }
 0x1be   :  { %3214 = vmatprep.subr.bf16.mxu0 %v4532_v0  ;;  %v4580_v0 = vld [vmem:[%s6261_s8 + $0x384] ss:$28 sps:$4 sm:$0xff]  }
 0x1c1   :  { %3215 = vmatpush1.bf16.msra.mxu0 %v4530_v1  ;;  %v4583_v1 = vld [vmem:[%s6261_s8 + $0x38c] ss:$28 sps:$4 sm:$0xff]  }
 0x1c2   :  { %3216 = vmatprep.subr.bf16.mxu0 %v4538_v3  ;;  %v5833_v3 = vld [vmem:[%s6260_s7] sm:$0xf] }
 0x1c5   :  { %3217 = vmatpush1.bf16.msra.mxu0 %v4536_v4  ;;  %v1904_v4 = vrot.slane %v5833_v3, %v5578_v55 }
 0x1c6   :  { %3218 = vmatprep.subr.bf16.mxu0 %v4544_v5  ;;  %v1908_v5 = vrot.slane %v5833_v3, %v5584_v57 }
 0x1c9   :  { %3219 = vmatpush1.bf16.msra.mxu0 %v4542_v6 }
 0x1ca   :  { %3220 = vmatprep.subr.bf16.mxu0 %v4550_v8 }
 0x1cd   :  { %3221 = vmatpush1.bf16.msra.mxu0 %v4548_v9 }
 0x1ce   :  { %3222 = vmatprep.subr.bf16.mxu0 %v4556_v12 }
 0x1d1   :  { %3223 = vmatpush1.bf16.msra.mxu0 %v4554_v13 }
 0x1d2   :  { %3224 = vmatprep.subr.bf16.mxu0 %v4562_v14 }
 0x1d5   :  { %3225 = vmatpush1.bf16.msra.mxu0 %v4560_v15 }
 0x1d6   :  { %3226 = vmatprep.subr.bf16.mxu0 %v4568_v53  ;;  %v4622_v53 = vld [vmem:[%s6261_s8 + $0x50c] ss:$28 sps:$4 sm:$0xff]  }
 0x1d9   :  { %3227 = vmatpush1.bf16.msra.mxu0 %v4566_v58  ;;  %v4620_v58 = vld [vmem:[%s6261_s8 + $0x508] ss:$28 sps:$4 sm:$0xff]  }
 0x1da   :  { %3228 = vmatprep.subr.bf16.mxu0 %v4574_v60 }
 0x1dd   :  { %3229 = vmatpush1.bf16.msra.mxu0 %v4572_v62  ;;  %v4631_v62 = vld [vmem:[%s6261_s8 + $0x54c] ss:$28 sps:$4 sm:$0xff]  }
 0x1de   :  { %3239 = vmatprep.subr.bf16.mxu0 %v4580_v0  ;;  %v4629_v0 = vld [vmem:[%s6261_s8 + $0x548] ss:$28 sps:$4 sm:$0xff]  }
 0x273   :  { %v4077_v26 = vpop.f32.mrb[4].mxu0 }
 0x274   :  { %v4078_v27 = vpop.f32.mrb[5].mxu0 }
 0x275   :  { %v4079_v28 = vadd.f32 %v4078_v27, %v4077_v26  ;;  %v4080_v29 = vpop.f32.mrb[6].mxu0  ;;  %v4487_v26 = vld [vmem:[%s6261_s8 + $0xc] ss:$28 sps:$4 sm:$0xff]  }
 0x276   :  { %v4081_v30 = vpop.f32.mrb[7].mxu0  ;;  %v4485_v27 = vld [vmem:[%s6261_s8 + $0x8] ss:$28 sps:$4 sm:$0xff]   ;;  %v4491_v29 = vld [vmem:[%s6261_s8 + $0x40] ss:$28 sps:$4 sm:$0xff]  }
 0x277   :  { %v1837_v32 = vadd.f32 %v4079_v28, %v3828_v31  ;;  %v4493_v28 = vld [vmem:[%s6261_s8 + $0x44] ss:$28 sps:$4 sm:$0xff]   ;;  %v4499_v30 = vld [vmem:[%s6261_s8 + $0x7c] ss:$28 sps:$4 sm:$0xff]  }
 0x278   :  { %v4497_v31 = vld [vmem:[%s6261_s8 + $0x78] ss:$28 sps:$4 sm:$0xff]  }
 0x282   :  { %v1876_v33 = vpop.f32.mrb[8].mxu1 }
 0x283   :  { %v5607_v34 = vadd.f32 %v1876_v33, %v1837_v32  ;;  %v1878_v35 = vpop.f32.mrb[9].mxu1  ;;  %v4505_v32 = vld [vmem:[%s6261_s8 + $0xb4] ss:$28 sps:$4 sm:$0xff]  }
 0x284   :  { %v1879_v36 = vpop.f32.mrb[10].mxu1  ;;  %v4503_v33 = vld [vmem:[%s6261_s8 + $0xb0] ss:$28 sps:$4 sm:$0xff]   ;;  %v4509_v35 = vld [vmem:[%s6261_s8 + $0xe8] ss:$28 sps:$4 sm:$0xff]  }
 0x285   :  { %v1883_v37 = vmul.f32 0.5, %v5607_v34  ;;  %v1880_v38 = vpop.f32.mrb[11].mxu1  ;;  %3601 = vst.msk [vmem:[#allocation4] sm:$0xff] %vm3600_vm1, %v5607_v34  ;;  %v4517_v36 = vld [vmem:[%s6261_s8 + $0x124] ss:$28 sps:$4 sm:$0xff]  }
 0x286   :  { %v4523_v38 = vld [vmem:[%s6261_s8 + $0x15c] ss:$28 sps:$4 sm:$0xff]  }
 0x287   :  { %v1884_v40 = vmul.f32 1.442695, %v1883_v37  ;;  %v4515_v37 = vld [vmem:[%s6261_s8 + $0x120] ss:$28 sps:$4 sm:$0xff]  }
 0x289   :  { %4732 = vpow2.f32 %v1884_v40  ;;  %v4529_v40 = vld [vmem:[%s6261_s8 + $0x194] ss:$28 sps:$4 sm:$0xff]  }
 0x293   :  { %v4733_v44 = vpop.eup %4732 }
 0x294   :  { %1887 = vrot.lane.b32.xlu0 %v4733_v44, %s4811_s20  ;;  %v4539_v44 = vld [vmem:[%s6261_s8 + $0x200] ss:$28 sps:$4 sm:$0xff]  }
 0x306   :  { %v1888_v17 = vpop.permute.xlu0 %1887 }
 0x307   :  { %v1890_v18 = vmul.f32 %v1888_v17, %v1882_v16 }
 0x309   :  { %v1891_v20 = vadd.f32 %v1890_v18, %v5607_v34  ;;  %v4511_v34 = vld [vmem:[%s6261_s8 + $0xec] ss:$28 sps:$4 sm:$0xff]   ;;  %v4578_v18 = vld [vmem:[%s6261_s8 + $0x380] ss:$28 sps:$4 sm:$0xff]  }
 0x30b   :  { %v1892_v22 = vpack.c.bf16 %v1891_v20, %v1891_v20  ;;  %v1916_v20 = vrot.slane %v5833_v3, %v5592_v11 }
 0x30d   :  { %3864 = vmatmul.mubr.msk.bf16.vlgmr.msra.gmra.mrb[12].mxu1 %vm1951_vm3, %v1892_v22 }
 0x30e   :  { %2010 = vmatpush1.bf16.msra.mxu1 %v4477_v21  ;;  %2041 = vmatprep.mubr.bf16.mxu1 %v4810_v2 }
 0x30f   :  { %3865 = vmatprep.subr.msk.bf16.mxu1 %vm1955_vm2, %v3862_v23  ;;  %v4589_v23 = vld [vmem:[%s6261_s8 + $0x3c4] ss:$28 sps:$4 sm:$0xff]  }
 0x312   :  { %2012 = vmatpush1.bf16.msra.mxu1 %v1963_v25 }
 0x313   :  { %3280 = vmatprep.subr.bf16.mxu1 %v4487_v26 }
 0x315   :  { %3866 = vmatmul.mubr.msk.bf16.vlgmr.msra.gmra.mrb[16].mxu1 %vm1951_vm3, %v1892_v22  ;;  %v4586_v22 = vld [vmem:[%s6261_s8 + $0x3bc] ss:$28 sps:$4 sm:$0xff]  }
 0x316   :  { %3281 = vmatpush1.bf16.msra.mxu1 %v4485_v27 }
 0x317   :  { %3282 = vmatprep.subr.bf16.mxu1 %v4493_v28  ;;  %v4584_v28 = vld [vmem:[%s6261_s8 + $0x3b8] ss:$28 sps:$4 sm:$0xff]  }
 0x31a   :  { %3283 = vmatpush1.bf16.msra.mxu1 %v4491_v29  ;;  %v4587_v29 = vld [vmem:[%s6261_s8 + $0x3c0] ss:$28 sps:$4 sm:$0xff]  }
 0x31b   :  { %3284 = vmatprep.subr.bf16.mxu1 %v4499_v30 }
 0x31e   :  { %3285 = vmatpush1.bf16.msra.mxu1 %v4497_v31  ;;  %v4592_v31 = vld [vmem:[%s6261_s8 + $0x3f4] ss:$28 sps:$4 sm:$0xff]  }
 0x31f   :  { %3286 = vmatprep.subr.bf16.mxu1 %v4505_v32  ;;  %v4595_v32 = vld [vmem:[%s6261_s8 + $0x3fc] ss:$28 sps:$4 sm:$0xff]  }
 0x322   :  { %3287 = vmatpush1.bf16.msra.mxu1 %v4503_v33 }
 0x323   :  { %3288 = vmatprep.subr.bf16.mxu1 %v4511_v34 }
 0x326   :  { %3289 = vmatpush1.bf16.msra.mxu1 %v4509_v35  ;;  %v4590_v35 = vld [vmem:[%s6261_s8 + $0x3f0] ss:$28 sps:$4 sm:$0xff]  }
 0x327   :  { %3290 = vmatprep.subr.bf16.mxu1 %v4517_v36  ;;  %v4593_v36 = vld [vmem:[%s6261_s8 + $0x3f8] ss:$28 sps:$4 sm:$0xff]  }
 0x32a   :  { %3291 = vmatpush1.bf16.msra.mxu1 %v4515_v37  ;;  %v4598_v37 = vld [vmem:[%s6261_s8 + $0x42c] ss:$28 sps:$4 sm:$0xff]  }
 0x32b   :  { %3292 = vmatprep.subr.bf16.mxu1 %v4523_v38  ;;  %v4601_v38 = vld [vmem:[%s6261_s8 + $0x434] ss:$28 sps:$4 sm:$0xff]  }
 0x32e   :  { %3293 = vmatpush1.bf16.msra.mxu1 %v4521_v39  ;;  %v4596_v39 = vld [vmem:[%s6261_s8 + $0x428] ss:$28 sps:$4 sm:$0xff]  }
 0x32f   :  { %3294 = vmatprep.subr.bf16.mxu1 %v4529_v40  ;;  %v4599_v40 = vld [vmem:[%s6261_s8 + $0x430] ss:$28 sps:$4 sm:$0xff]  }
 0x332   :  { %3295 = vmatpush1.bf16.msra.mxu1 %v4527_v41  ;;  %v4604_v41 = vld [vmem:[%s6261_s8 + $0x464] ss:$28 sps:$4 sm:$0xff]  }
 0x333   :  { %3296 = vmatprep.subr.bf16.mxu1 %v4535_v42  ;;  %v4607_v42 = vld [vmem:[%s6261_s8 + $0x46c] ss:$28 sps:$4 sm:$0xff]  }
 0x336   :  { %3297 = vmatpush1.bf16.msra.mxu1 %v4533_v7  ;;  %v4602_v7 = vld [vmem:[%s6261_s8 + $0x460] ss:$28 sps:$4 sm:$0xff]  }
 0x337   :  { %3298 = vmatprep.subr.bf16.mxu1 %v4541_v43  ;;  %v4605_v43 = vld [vmem:[%s6261_s8 + $0x468] ss:$28 sps:$4 sm:$0xff]  }
 0x33a   :  { %3299 = vmatpush1.bf16.msra.mxu1 %v4539_v44  ;;  %v4610_v44 = vld [vmem:[%s6261_s8 + $0x49c] ss:$28 sps:$4 sm:$0xff]  }
 0x33b   :  { %3300 = vmatprep.subr.bf16.mxu1 %v4547_v45  ;;  %v4613_v45 = vld [vmem:[%s6261_s8 + $0x4a4] ss:$28 sps:$4 sm:$0xff]  }
 0x33e   :  { %3301 = vmatpush1.bf16.msra.mxu1 %v4545_v46  ;;  %v4608_v46 = vld [vmem:[%s6261_s8 + $0x498] ss:$28 sps:$4 sm:$0xff]  }
 0x33f   :  { %3302 = vmatprep.subr.bf16.mxu1 %v4553_v47  ;;  %v4611_v47 = vld [vmem:[%s6261_s8 + $0x4a0] ss:$28 sps:$4 sm:$0xff]  }
 0x342   :  { %3303 = vmatpush1.bf16.msra.mxu1 %v4551_v48  ;;  %v4616_v48 = vld [vmem:[%s6261_s8 + $0x4d4] ss:$28 sps:$4 sm:$0xff]  }
 0x343   :  { %3304 = vmatprep.subr.bf16.mxu1 %v4559_v49  ;;  %v4619_v49 = vld [vmem:[%s6261_s8 + $0x4dc] ss:$28 sps:$4 sm:$0xff]  }
 0x346   :  { %3305 = vmatpush1.bf16.msra.mxu1 %v4557_v50  ;;  %v4614_v50 = vld [vmem:[%s6261_s8 + $0x4d0] ss:$28 sps:$4 sm:$0xff]  }
 0x347   :  { %3306 = vmatprep.subr.bf16.mxu1 %v4565_v51  ;;  %v4617_v51 = vld [vmem:[%s6261_s8 + $0x4d8] ss:$28 sps:$4 sm:$0xff]  }
 0x34a   :  { %3307 = vmatpush1.bf16.msra.mxu1 %v4563_v52  ;;  %v1912_v52 = vrot.slane %v5833_v3, %v5589_v10  ;;  %v4634_v3 = vld [vmem:[%s6261_s8 + $0x14] ss:$28 sps:$4 sm:$0xff]  }
 0x34b   :  { %3308 = vmatprep.subr.bf16.mxu1 %v4571_v56  ;;  %v4625_v56 = vld [vmem:[%s6261_s8 + $0x514] ss:$28 sps:$4 sm:$0xff]  }
 0x34e   :  { %3309 = vmatpush1.bf16.msra.mxu1 %v4569_v59  ;;  %v4623_v59 = vld [vmem:[%s6261_s8 + $0x510] ss:$28 sps:$4 sm:$0xff]  }
 0x34f   :  { %3310 = vmatprep.subr.bf16.mxu1 %v4577_v61  ;;  %v4628_v61 = vld [vmem:[%s6261_s8 + $0x544] ss:$28 sps:$4 sm:$0xff]  }
 0x352   :  { %3311 = vmatpush1.bf16.msra.mxu1 %v4575_v63  ;;  %v4626_v63 = vld [vmem:[%s6261_s8 + $0x540] ss:$28 sps:$4 sm:$0xff]  }
 0x353   :  { %3321 = vmatprep.subr.bf16.mxu1 %v4583_v1 }
 0x3e0   :  { %v2002_v6 = vpop.f32.mrb[12].mxu1 }
 0x3e1   :  { %v2003_v8 = vadd.f32 %v2002_v6, %v1904_v4  ;;  %v2004_v9 = vpop.f32.mrb[13].mxu1  ;;  %v4635_v4 = vld [vmem:[%s6261_s8 + $0x1d8] ss:$28 sps:$4 sm:$0xff]  }
 0x3e2   :  { %v2005_v12 = vadd.f32 %v2004_v9, %v1908_v5  ;;  %v2006_v13 = vpop.f32.mrb[14].mxu1  ;;  %v4632_v5 = vld [vmem:[%s6261_s8 + $0x10] ss:$28 sps:$4 sm:$0xff]  }
 0x3e3   :  { %v2050_v14 = vmax.f32 %v2003_v8, 0.0  ;;  %v2007_v15 = vpop.f32.mrb[15].mxu1  ;;  %v4636_v8 = vld [vmem:[%s6261_s8 + $0x18] ss:$28 sps:$4 sm:$0xff]   ;;  %v4639_v9 = vld [vmem:[%s6261_s8 + $0x4c] ss:$28 sps:$4 sm:$0xff]  }
 0x3e4   :  { %v2051_v16 = vmax.f32 %v2005_v12, 0.0  ;;  %v4640_v12 = vld [vmem:[%s6261_s8 + $0x210] ss:$28 sps:$4 sm:$0xff]   ;;  %v4637_v13 = vld [vmem:[%s6261_s8 + $0x48] ss:$28 sps:$4 sm:$0xff]  }
 0x3e5   :  { %v5849_v21 = vpack.c.bf16 %v2050_v14, %v2050_v14  ;;  %v4641_v14 = vld [vmem:[%s6261_s8 + $0x50] ss:$28 sps:$4 sm:$0xff]   ;;  %v4644_v15 = vld [vmem:[%s6261_s8 + $0x84] ss:$28 sps:$4 sm:$0xff]  }
 0x3e6   :  { %v5839_v17 = vpack.c.bf16 %v2051_v16, %v2051_v16  ;;  %v4645_v16 = vld [vmem:[%s6261_s8 + $0x248] ss:$28 sps:$4 sm:$0xff]  }
 0x3e8   :  { %v5857_v24 = vpop.f32.mrb[16].mxu1  ;;  %3230 = vmatprep.mubr.bf16.mxu0 %v5839_v17  ;;  %3312 = vmatprep.mubr.bf16.mxu1 %v5839_v17 }
 0x3e9   :  { %v2045_v25 = vpop.f32.mrb[17].mxu1  ;;  %3231 = vmatmul.mubr.bf16.vlgmr.msra.gmra.mrb[8].mxu0 %v5849_v21  ;;  %3313 = vmatmul.mubr.bf16.vlgmr.msra.gmra.mrb[20].mxu1 %v5849_v21  ;;  %v2044_v60 = vadd.f32 %v5857_v24, %v1912_v52  ;;  %v4654_v24 = vld [vmem:[%s6261_s8 + $0xf4] ss:$28 sps:$4 sm:$0xff]  }
 0x3ea   :  { %v2046_v26 = vadd.f32 %v2045_v25, %v1916_v20  ;;  %3240 = vmatpush1.bf16.msra.mxu0 %v4578_v18  ;;  %3322 = vmatpush1.bf16.msra.mxu1 %v4581_v19  ;;  %v2047_v27 = vpop.f32.mrb[18].mxu1  ;;  %v4642_v18 = vld [vmem:[%s6261_s8 + $0x80] ss:$28 sps:$4 sm:$0xff]   ;;  %v4655_v25 = vld [vmem:[%s6261_s8 + $0x2b8] ss:$28 sps:$4 sm:$0xff]  }
 0x3eb   :  { %v2048_v30 = vpop.f32.mrb[19].mxu1  ;;  %3241 = vmatprep.subr.bf16.mxu0 %v4586_v22  ;;  %3323 = vmatprep.subr.bf16.mxu1 %v4589_v23  ;;  %v2052_v1 = vmax.f32 %v2044_v60, 0.0  ;;  %v4649_v19 = vld [vmem:[%s6261_s8 + $0xbc] ss:$28 sps:$4 sm:$0xff]   ;;  %v4690_v52 = vld [vmem:[%s6261_s8 + $0x2b4] ss:$28 sps:$4 sm:$0xff]  }
 0x3ec   :  { %v2053_v33 = vmax.f32 %v2046_v26, 0.0  ;;  %v4650_v20 = vld [vmem:[%s6261_s8 + $0x280] ss:$28 sps:$4 sm:$0xff]   ;;  %v4647_v22 = vld [vmem:[%s6261_s8 + $0xb8] ss:$28 sps:$4 sm:$0xff]  }
 0x3ed   :  { %v5971_v6 = vpack.c.bf16 %v2052_v1, %v2052_v1  ;;  %v4651_v23 = vld [vmem:[%s6261_s8 + $0xc0] ss:$28 sps:$4 sm:$0xff]   ;;  %v4652_v26 = vld [vmem:[%s6261_s8 + $0xf0] ss:$28 sps:$4 sm:$0xff]   ;;  %v4656_v27 = vld [vmem:[%s6261_s8 + $0xf8] ss:$28 sps:$4 sm:$0xff]  }
 0x3ee   :  { %v5875_v34 = vpack.c.bf16 %v2053_v33, %v2053_v33  ;;  %3242 = vmatpush1.bf16.msra.mxu0 %v4584_v28  ;;  %3324 = vmatpush1.bf16.msra.mxu1 %v4587_v29  ;;  %v4659_v28 = vld [vmem:[%s6261_s8 + $0x12c] ss:$28 sps:$4 sm:$0xff]   ;;  %v4700_v1 = vld [vmem:[%s6261_s8 + $0x358] ss:$28 sps:$4 sm:$0xff]  }
 0x3ef   :  { %3243 = vmatprep.subr.bf16.mxu0 %v4592_v31  ;;  %3325 = vmatprep.subr.bf16.mxu1 %v4595_v32  ;;  %v4660_v29 = vld [vmem:[%s6261_s8 + $0x2f0] ss:$28 sps:$4 sm:$0xff]   ;;  %v4657_v30 = vld [vmem:[%s6261_s8 + $0x128] ss:$28 sps:$4 sm:$0xff]  }
 0x3f0   :  { %4042 = vmatprep.mubr.msk.bf16.mxu0 %vm1252_vm0, %v5875_v34  ;;  %4043 = vmatprep.mubr.msk.bf16.mxu1 %vm1252_vm0, %v5875_v34  ;;  %v4661_v31 = vld [vmem:[%s6261_s8 + $0x130] ss:$28 sps:$4 sm:$0xff]   ;;  %v4664_v32 = vld [vmem:[%s6261_s8 + $0x164] ss:$28 sps:$4 sm:$0xff]  }
 0x3f1   :  { %v4665_v33 = vld [vmem:[%s6261_s8 + $0x328] ss:$28 sps:$4 sm:$0xff]   ;;  %v4695_v60 = vld [vmem:[%s6261_s8 + $0x4b0] ss:$28 sps:$4 sm:$0xff]  }
 0x3f2   :  { %3244 = vmatpush1.bf16.msra.mxu0 %v4590_v35  ;;  %3326 = vmatpush1.bf16.msra.mxu1 %v4593_v36  ;;  %v4662_v35 = vld [vmem:[%s6261_s8 + $0x160] ss:$28 sps:$4 sm:$0xff]   ;;  %v4666_v36 = vld [vmem:[%s6261_s8 + $0x168] ss:$28 sps:$4 sm:$0xff]  }
 0x3f3   :  { %3245 = vmatprep.subr.bf16.mxu0 %v4598_v37  ;;  %3327 = vmatprep.subr.bf16.mxu1 %v4601_v38  ;;  %v4669_v37 = vld [vmem:[%s6261_s8 + $0x19c] ss:$28 sps:$4 sm:$0xff]  }
 0x3f4   :  { %v4670_v38 = vld [vmem:[%s6261_s8 + $0x360] ss:$28 sps:$4 sm:$0xff]  }
 0x3f6   :  { %3246 = vmatpush1.bf16.msra.mxu0 %v4596_v39  ;;  %3328 = vmatpush1.bf16.msra.mxu1 %v4599_v40  ;;  %v4667_v39 = vld [vmem:[%s6261_s8 + $0x198] ss:$28 sps:$4 sm:$0xff]   ;;  %v4671_v40 = vld [vmem:[%s6261_s8 + $0x1a0] ss:$28 sps:$4 sm:$0xff]  }
 0x3f7   :  { %3247 = vmatprep.subr.bf16.mxu0 %v4604_v41  ;;  %3329 = vmatprep.subr.bf16.mxu1 %v4607_v42  ;;  %v4674_v41 = vld [vmem:[%s6261_s8 + $0x1d4] ss:$28 sps:$4 sm:$0xff]  }
 0x3f8   :  { %v4672_v42 = vld [vmem:[%s6261_s8 + $0x1d0] ss:$28 sps:$4 sm:$0xff]  }
 0x3fa   :  { %3248 = vmatpush1.bf16.msra.mxu0 %v4602_v7  ;;  %3330 = vmatpush1.bf16.msra.mxu1 %v4605_v43  ;;  %v4675_v7 = vld [vmem:[%s6261_s8 + $0x398] ss:$28 sps:$4 sm:$0xff]   ;;  %v4678_v43 = vld [vmem:[%s6261_s8 + $0x20c] ss:$28 sps:$4 sm:$0xff]  }
 0x3fb   :  { %3249 = vmatprep.subr.bf16.mxu0 %v4610_v44  ;;  %3331 = vmatprep.subr.bf16.mxu1 %v4613_v45  ;;  %v4676_v44 = vld [vmem:[%s6261_s8 + $0x208] ss:$28 sps:$4 sm:$0xff]   ;;  %v4679_v45 = vld [vmem:[%s6261_s8 + $0x3d0] ss:$28 sps:$4 sm:$0xff]  }
 0x3fe   :  { %3250 = vmatpush1.bf16.msra.mxu0 %v4608_v46  ;;  %3332 = vmatpush1.bf16.msra.mxu1 %v4611_v47  ;;  %v4682_v46 = vld [vmem:[%s6261_s8 + $0x244] ss:$28 sps:$4 sm:$0xff]  }
 0x3ff   :  { %3251 = vmatprep.subr.bf16.mxu0 %v4616_v48  ;;  %3333 = vmatprep.subr.bf16.mxu1 %v4619_v49  ;;  %v4680_v47 = vld [vmem:[%s6261_s8 + $0x240] ss:$28 sps:$4 sm:$0xff]   ;;  %v4683_v48 = vld [vmem:[%s6261_s8 + $0x408] ss:$28 sps:$4 sm:$0xff]  }
 0x400   :  { %v4686_v49 = vld [vmem:[%s6261_s8 + $0x27c] ss:$28 sps:$4 sm:$0xff]  }
 0x402   :  { %3252 = vmatpush1.bf16.msra.mxu0 %v4614_v50  ;;  %3334 = vmatpush1.bf16.msra.mxu1 %v4617_v51  ;;  %v4684_v50 = vld [vmem:[%s6261_s8 + $0x278] ss:$28 sps:$4 sm:$0xff]   ;;  %v4687_v51 = vld [vmem:[%s6261_s8 + $0x440] ss:$28 sps:$4 sm:$0xff]  }
 0x403   :  { %3253 = vmatprep.subr.bf16.mxu0 %v4622_v53  ;;  %3335 = vmatprep.subr.bf16.mxu1 %v4625_v56  ;;  %v4688_v53 = vld [vmem:[%s6261_s8 + $0x2b0] ss:$28 sps:$4 sm:$0xff]   ;;  %v4691_v56 = vld [vmem:[%s6261_s8 + $0x478] ss:$28 sps:$4 sm:$0xff]  }
 0x406   :  { %3254 = vmatpush1.bf16.msra.mxu0 %v4620_v58  ;;  %3336 = vmatpush1.bf16.msra.mxu1 %v4623_v59  ;;  %v4694_v58 = vld [vmem:[%s6261_s8 + $0x2ec] ss:$28 sps:$4 sm:$0xff]  }
 0x407   :  { %3255 = vmatprep.subr.bf16.mxu0 %v4628_v61  ;;  %3337 = vmatprep.subr.bf16.mxu1 %v4631_v62  ;;  %v4692_v59 = vld [vmem:[%s6261_s8 + $0x2e8] ss:$28 sps:$4 sm:$0xff]   ;;  %v4696_v62 = vld [vmem:[%s6261_s8 + $0x320] ss:$28 sps:$4 sm:$0xff]  }
 0x408   :  { %v4698_v61 = vld [vmem:[%s6261_s8 + $0x324] ss:$28 sps:$4 sm:$0xff]  }
 0x40a   :  { %3256 = vmatpush1.bf16.msra.mxu0 %v4626_v63  ;;  %3338 = vmatpush1.bf16.msra.mxu1 %v4629_v0  ;;  %v4699_v63 = vld [vmem:[%s6261_s8 + $0x4e8] ss:$28 sps:$4 sm:$0xff]   ;;  %v4702_v0 = vld [vmem:[%s6261_s8 + $0x35c] ss:$28 sps:$4 sm:$0xff]  }
 0x40b   :  { %3362 = vmatprep.subr.bf16.mxu0 %v4634_v3  ;;  %4083 = vmatprep.subr.bf16.mxu1 %v4635_v4  ;;  %v4703_v3 = vld [vmem:[%s6261_s8 + $0x520] ss:$28 sps:$4 sm:$0xff]   ;;  %v4706_v4 = vld [vmem:[%s6261_s8 + $0x394] ss:$28 sps:$4 sm:$0xff]  }
 0x40d   :  { %3272 = vmatmul.mubr.bf16.vlgmr.msra.gmra.mrb[8].mxu0 %v5971_v6  ;;  %3354 = vmatmul.mubr.bf16.vlgmr.msra.gmra.mrb[20].mxu1 %v5971_v6 }
 0x40e   :  { %3363 = vmatpush1.bf16.msra.mxu0 %v4632_v5  ;;  %3394 = vmatprep.mubr.bf16.mxu0 %v5839_v17  ;;  %v4704_v5 = vld [vmem:[%s6261_s8 + $0x390] ss:$28 sps:$4 sm:$0xff]  }
 0x40f   :  { %4084 = vmatpush3.bf16.msra.mxu1 %v4636_v8  ;;  %3476 = vmatprep.mubr.bf16.mxu1 %v5839_v17  ;;  %v4646_v17 = vld [vmem:[%s6261_s8 + $0x88] ss:$28 sps:$4 sm:$0xff]   ;;  %v4707_v8 = vld [vmem:[%s6261_s8 + $0x558] ss:$28 sps:$4 sm:$0xff]  }
 0x410   :  { %3364 = vmatprep.subr.bf16.mxu0 %v4639_v9  ;;  %4085 = vmatprep.subr.bf16.mxu1 %v4640_v12  ;;  %v4710_v9 = vld [vmem:[%s6261_s8 + $0x3cc] ss:$28 sps:$4 sm:$0xff]  }
 0x411   :  { %v4708_v12 = vld [vmem:[%s6261_s8 + $0x3c8] ss:$28 sps:$4 sm:$0xff]  }
 0x412   :  { %3365 = vmatpush1.bf16.msra.mxu0 %v4637_v13  ;;  %v4713_v13 = vld [vmem:[%s6261_s8 + $0x404] ss:$28 sps:$4 sm:$0xff]  }
 0x413   :  { %4086 = vmatpush3.bf16.msra.mxu1 %v4641_v14  ;;  %3366 = vmatprep.subr.bf16.mxu0 %v4644_v15  ;;  %v4719_v14 = vld [vmem:[%s6261_s8 + $0x474] ss:$28 sps:$4 sm:$0xff]  }
 0x414   :  { %4087 = vmatprep.subr.bf16.mxu1 %v4645_v16  ;;  %v4717_v15 = vld [vmem:[%s6261_s8 + $0x470] ss:$28 sps:$4 sm:$0xff]  }
 0x415   :  { %v4722_v16 = vld [vmem:[%s6261_s8 + $0x4ac] ss:$28 sps:$4 sm:$0xff]  }
 0x416   :  { %3367 = vmatpush1.bf16.msra.mxu0 %v4642_v18  ;;  %v4720_v18 = vld [vmem:[%s6261_s8 + $0x4a8] ss:$28 sps:$4 sm:$0xff]  }
 0x417   :  { %4088 = vmatpush3.bf16.msra.mxu1 %v4646_v17  ;;  %3368 = vmatprep.subr.bf16.mxu0 %v4649_v19  ;;  %v4725_v17 = vld [vmem:[%s6261_s8 + $0x4e4] ss:$28 sps:$4 sm:$0xff]  }
 0x418   :  { %4089 = vmatprep.subr.bf16.mxu1 %v4650_v20  ;;  %v4723_v19 = vld [vmem:[%s6261_s8 + $0x4e0] ss:$28 sps:$4 sm:$0xff]  }
 0x419   :  { %v4728_v20 = vld [vmem:[%s6261_s8 + $0x51c] ss:$28 sps:$4 sm:$0xff]  }
 0x41a   :  { %3369 = vmatpush1.bf16.msra.mxu0 %v4647_v22  ;;  %v4726_v22 = vld [vmem:[%s6261_s8 + $0x518] ss:$28 sps:$4 sm:$0xff]  }
 0x41b   :  { %4090 = vmatpush3.bf16.msra.mxu1 %v4651_v23  ;;  %3370 = vmatprep.subr.bf16.mxu0 %v4654_v24  ;;  %v4731_v23 = vld [vmem:[%s6261_s8 + $0x554] ss:$28 sps:$4 sm:$0xff]  }
 0x41c   :  { %4091 = vmatprep.subr.bf16.mxu1 %v4655_v25  ;;  %v4729_v24 = vld [vmem:[%s6261_s8 + $0x550] ss:$28 sps:$4 sm:$0xff]   ;;  %v6213_v25 = vld [vmem:[%s6262_s9] sm:$0x7f] }
 0x41e   :  { %3371 = vmatpush1.bf16.msra.mxu0 %v4652_v26  ;;  %v2263_v26 = vrot.slane %v6213_v25, %v5578_v55 }
 0x41f   :  { %4092 = vmatpush3.bf16.msra.mxu1 %v4656_v27  ;;  %3372 = vmatprep.subr.bf16.mxu0 %v4659_v28  ;;  %v2271_v27 = vrot.slane %v6213_v25, %v5589_v10  ;;  %v2267_v28 = vrot.slane %v6213_v25, %v5584_v57 }
 0x420   :  { %4093 = vmatprep.subr.bf16.mxu1 %v4660_v29  ;;  %v2275_v29 = vrot.slane %v6213_v25, %v5592_v11 }
 0x422   :  { %3373 = vmatpush1.bf16.msra.mxu0 %v4657_v30 }
 0x423   :  { %4094 = vmatpush3.bf16.msra.mxu1 %v4661_v31  ;;  %3374 = vmatprep.subr.bf16.mxu0 %v4664_v32 }
 0x424   :  { %4095 = vmatprep.subr.bf16.mxu1 %v4665_v33 }
 0x426   :  { %3375 = vmatpush1.bf16.msra.mxu0 %v4662_v35 }
 0x427   :  { %4096 = vmatpush3.bf16.msra.mxu1 %v4666_v36  ;;  %3376 = vmatprep.subr.bf16.mxu0 %v4669_v37 }
 0x428   :  { %4097 = vmatprep.subr.bf16.mxu1 %v4670_v38 }
 0x42a   :  { %3377 = vmatpush1.bf16.msra.mxu0 %v4667_v39 }
 0x42b   :  { %4098 = vmatpush3.bf16.msra.mxu1 %v4671_v40  ;;  %3378 = vmatprep.subr.bf16.mxu0 %v4674_v41 }
 0x42c   :  { %3484 = vmatprep.subr.bf16.mxu1 %v4810_v2 }
 0x42e   :  { %3477 = vmatmul.mubr.bf16.vlgmr.msra.gmra.mrb[24].mxu1 %v5849_v21  ;;  %3379 = vmatpush1.bf16.msra.mxu0 %v4672_v42 }
 0x42f   :  { %3485 = vmatpush1.bf16.msra.mxu1 %v4675_v7  ;;  %4045 = vmatprep.mubr.msk.bf16.mxu1 %vm1252_vm0, %v5875_v34 }
 0x430   :  { %3380 = vmatprep.subr.bf16.mxu0 %v4678_v43  ;;  %3486 = vmatprep.subr.bf16.mxu1 %v4810_v2 }
 0x432   :  { %3381 = vmatpush1.bf16.msra.mxu0 %v4676_v44 }
 0x433   :  { %3487 = vmatpush1.bf16.msra.mxu1 %v4679_v45  ;;  %3382 = vmatprep.subr.bf16.mxu0 %v4682_v46 }
 0x434   :  { %3488 = vmatprep.subr.bf16.mxu1 %v4810_v2 }
 0x436   :  { %3383 = vmatpush1.bf16.msra.mxu0 %v4680_v47 }
 0x437   :  { %3489 = vmatpush1.bf16.msra.mxu1 %v4683_v48  ;;  %3384 = vmatprep.subr.bf16.mxu0 %v4686_v49 }
 0x438   :  { %3490 = vmatprep.subr.bf16.mxu1 %v4810_v2 }
 0x43a   :  { %3385 = vmatpush1.bf16.msra.mxu0 %v4684_v50 }
 0x43b   :  { %3491 = vmatpush1.bf16.msra.mxu1 %v4687_v51  ;;  %3386 = vmatprep.subr.bf16.mxu0 %v4690_v52 }
 0x43c   :  { %3492 = vmatprep.subr.bf16.mxu1 %v4810_v2 }
 0x43e   :  { %3387 = vmatpush1.bf16.msra.mxu0 %v4688_v53 }
 0x43f   :  { %3493 = vmatpush1.bf16.msra.mxu1 %v4691_v56  ;;  %3388 = vmatprep.subr.bf16.mxu0 %v4694_v58 }
 0x440   :  { %3494 = vmatprep.subr.bf16.mxu1 %v4810_v2 }
 0x442   :  { %3389 = vmatpush1.bf16.msra.mxu0 %v4692_v59 }
 0x443   :  { %3495 = vmatpush1.bf16.msra.mxu1 %v4695_v60  ;;  %3390 = vmatprep.subr.bf16.mxu0 %v4698_v61 }
 0x444   :  { %3496 = vmatprep.subr.bf16.mxu1 %v4810_v2 }
 0x446   :  { %3391 = vmatpush1.bf16.msra.mxu0 %v4696_v62 }
 0x447   :  { %3497 = vmatpush1.bf16.msra.mxu1 %v4699_v63  ;;  %3392 = vmatprep.subr.bf16.mxu0 %v4702_v0 }
 0x448   :  { %3498 = vmatprep.subr.bf16.mxu1 %v4810_v2 }
 0x44a   :  { %3393 = vmatpush1.bf16.msra.mxu0 %v4700_v1 }
 0x44b   :  { %3499 = vmatpush1.bf16.msra.mxu1 %v4703_v3  ;;  %3403 = vmatprep.subr.bf16.mxu0 %v4706_v4 }
 0x44c   :  { %3500 = vmatprep.subr.bf16.mxu1 %v4810_v2  ;;  %v4711_v2 = vld [vmem:[%s6261_s8 + $0x400] ss:$28 sps:$4 sm:$0xff]  }
 0x44d   :  { %3395 = vmatmul.mubr.bf16.vlgmr.msra.gmra.mrb[12].mxu0 %v5849_v21  ;;  %v4716_v21 = vld [vmem:[%s6261_s8 + $0x43c] ss:$28 sps:$4 sm:$0xff]  }
 0x44e   :  { %3404 = vmatpush1.bf16.msra.mxu0 %v4704_v5  ;;  %4044 = vmatprep.mubr.msk.bf16.mxu0 %vm1252_vm0, %v5875_v34  ;;  %v4714_v34 = vld [vmem:[%s6261_s8 + $0x438] ss:$28 sps:$4 sm:$0xff]   ;;  %s4812_s8 = smov [#allocation4]  }
 0x44f   :  { %3501 = vmatpush1.bf16.msra.mxu1 %v4707_v8  ;;  %3405 = vmatprep.subr.bf16.mxu0 %v4710_v9  ;;  %s3618_s9 = sshll.u32 %s4812_s8, 4  ;;  %s3619_s9 = int_to_ptr.vmem [resolvable:$true] %s3618_s9 }
 0x450   :  { %s4762_s15 = scalar_lea.vmem %s3619_s9, 128  ;;  %p4767_p1 = scmp.lt.s32.totalorder %s3619_s9, %s3619_s9 }
 0x451   :  { %p4763_p0 = scmp.ne.s32.totalorder %s3619_s9, %s4762_s15  ;;  %p4768_p2 = scmp.lt.s32.totalorder %s4762_s15, %s4762_s15 }
 0x452   :  { %3517 = vmatmul.mubr.bf16.vlgmr.msra.gmra.mrb[28].mxu1 %v5971_v6  ;;  %3406 = vmatpush1.bf16.msra.mxu0 %v4708_v12 }
 0x453   :  { %3407 = vmatprep.subr.bf16.mxu0 %v4713_v13  ;;  %p4769_p3 = por %p4768_p2, %p4767_p1 }
 0x455   :  { %p4770_p4 = pnand %p4769_p3, %p4763_p0 }
 0x456   :  { %3408 = vmatpush1.bf16.msra.mxu0 %v4711_v2 }
 0x457   :  { %3409 = vmatprep.subr.bf16.mxu0 %v4716_v21 }
 0x45a   :  { %3410 = vmatpush1.bf16.msra.mxu0 %v4714_v34 }
 0x45b   :  { %3411 = vmatprep.subr.bf16.mxu0 %v4719_v14 }
 0x45e   :  { %3412 = vmatpush1.bf16.msra.mxu0 %v4717_v15 }
 0x45f   :  { %3413 = vmatprep.subr.bf16.mxu0 %v4722_v16 }
 0x462   :  { %3414 = vmatpush1.bf16.msra.mxu0 %v4720_v18 }
 0x463   :  { %3415 = vmatprep.subr.bf16.mxu0 %v4725_v17 }
 0x466   :  { %3416 = vmatpush1.bf16.msra.mxu0 %v4723_v19 }
 0x467   :  { %3417 = vmatprep.subr.bf16.mxu0 %v4728_v20 }
 0x46a   :  { %3418 = vmatpush1.bf16.msra.mxu0 %v4726_v22 }
 0x46b   :  { %3419 = vmatprep.subr.bf16.mxu0 %v4731_v23 }
 0x46e   :  { %3420 = vmatpush1.bf16.msra.mxu0 %v4729_v24 }
 0x471   :  { %3436 = vmatmul.mubr.bf16.vlgmr.msra.gmra.mrb[12].mxu0 %v5971_v6 }
 0x4e0   :  { %v3273_v30 = vpop.f32.mrb[8].mxu0  ;;  %v3355_v31 = vpop.f32.mrb[20].mxu1 }
 0x4e1   :  { %v4111_v6 = vadd.f32 %v3273_v30, %v2263_v26  ;;  %v4113_v32 = vadd.f32 %v3355_v31, %v2271_v27  ;;  %v3275_v33 = vpop.f32.mrb[9].mxu0  ;;  %v3357_v35 = vpop.f32.mrb[21].mxu1 }
 0x4e2   :  { %v4112_v36 = vadd.f32 %v3275_v33, %v2267_v28  ;;  %v4114_v37 = vadd.f32 %v3357_v35, %v2275_v29  ;;  %v3277_v38 = vpop.f32.mrb[10].mxu0  ;;  %v3359_v39 = vpop.f32.mrb[22].mxu1 }
 0x4e3   :  { %v4046_v55 = vmul.f32 -1.442695, %v4111_v6  ;;  %v4048_v40 = vmul.f32 -1.442695, %v4113_v32  ;;  %v3278_v41 = vpop.f32.mrb[11].mxu0  ;;  %v3360_v10 = vpop.f32.mrb[23].mxu1 }
 0x4e4   :  { %v4047_v42 = vmul.f32 -1.442695, %v4112_v36  ;;  %v4049_v7 = vmul.f32 -1.442695, %v4114_v37 }
 0x4e5   :  { %4734 = vpow2.f32 %v4046_v55 }
 0x4e6   :  { %4736 = vpow2.f32 %v4048_v40 }
 0x4e7   :  { %4738 = vpow2.f32 %v4047_v42 }
 0x4e8   :  { %4773 = shalt.err (!%p4770_p4)
}
 0x4e9   :  { %s4774_s16 = scalar_lea.hbm %s6264_s11, 128 }
 0x4ea   :  { %p4775_p5 = scmp.ne.s32.totalorder %s6264_s11, %s4774_s16  ;;  %p4778_p6 = scmp.lt.u32.totalorder %s4774_s16, %s6264_s11 }
 0x4ec   :  { %p4780_p7 = pnand %p4778_p6, %p4775_p5 }
 0x4ee   :  { %4783 = shalt.err (!%p4780_p7)
}
 0x4ef   :  { %3621 = dma.vmem_to_hbm [thread:$0]  %s3619_s9, 128, %s6264_s11, [#allocation5]   ;;  %4740 = vpow2.f32 %v4049_v7  ;;  %v4735_v57 = vpop.eup %4734  ;;  %v2286_v63 = vsub.s32 6, %v5575_v54  ;;  %v2278_v21 = vsub.s32 4, %v5575_v54  ;;  %v2282_v34 = vsub.s32 5, %v5575_v54 }
 0x4f0   :  { %v4737_v11 = vpop.eup %4736  ;;  %v3545_v43 = vadd.f32 1.0, %v4735_v57  ;;  %vm3598_vm4 = vcmask 125952   ;;  %s4813_s11 = smov [#allocation2]  }
 0x4f1   :  { %v4739_v44 = vpop.eup %4738  ;;  %v3547_v45 = vadd.f32 1.0, %v4737_v11  ;;  %v2287_v0 = vrot.slane %v6213_v25, %v2286_v63  ;;  %v2279_v15 = vrot.slane %v6213_v25, %v2278_v21  ;;  %v2283_v18 = vrot.slane %v6213_v25, %v2282_v34  ;;  %s3608_s22 = sshll.u32 %s4813_s11, 4  ;;  %s3609_s22 = int_to_ptr.vmem [resolvable:$true] %s3608_s22 }
 0x4f2   :  { %4742 = vrcp.f32 %v3545_v43  ;;  %v3546_v47 = vadd.f32 1.0, %v4739_v44  ;;  %s4784_s23 = scalar_lea.vmem %s3609_s22, 448  ;;  %p4789_p9 = scmp.lt.s32.totalorder %s3609_s22, %s3609_s22 }
 0x4f3   :  { %4744 = vrcp.f32 %v3547_v45  ;;  %p4785_p8 = scmp.ne.s32.totalorder %s3609_s22, %s4784_s23  ;;  %p4790_p10 = scmp.lt.s32.totalorder %s4784_s23, %s4784_s23 }
 0x4f4   :  { %4746 = vrcp.f32 %v3546_v47 }
 0x4f5   :  { %p4791_p11 = por %p4790_p10, %p4789_p9 }
 0x4f7   :  { %p4792_p12 = pnand %p4791_p11, %p4785_p8 }
 0x4f9   :  { %v4741_v46 = vpop.eup %4740 }
 0x4fa   :  { %v3548_v48 = vadd.f32 1.0, %v4741_v46 }
 0x4fc   :  { %4748 = vrcp.f32 %v3548_v48  ;;  %v4743_v49 = vpop.eup %4742 }
 0x4fd   :  { %v4745_v50 = vpop.eup %4744 }
 0x4fe   :  { %v4747_v51 = vpop.eup %4746 }
 0x4ff   :  { %v4057_v53 = vpack.c.bf16 %v4747_v51, %v4743_v49 }
 0x501   :  { %v4099_v58 = vpop.f32.mrb[24].mxu1  ;;  %3595 = vst [vmem:[#allocation2] sm:$0xff] %v4057_v53 }
 0x502   :  { %v4100_v59 = vpop.f32.mrb[25].mxu1 }
 0x503   :  { %v4101_v60 = vadd.f32 %v4100_v59, %v4099_v58  ;;  %v4102_v61 = vpop.f32.mrb[26].mxu1 }
 0x504   :  { %v4103_v62 = vpop.f32.mrb[27].mxu1 }
 0x505   :  { %v3479_v1 = vadd.f32 %v4101_v60, %v2287_v0 }
 0x506   :  { %v4749_v52 = vpop.eup %4748 }
 0x507   :  { %v4058_v56 = vpack.c.bf16 %v4749_v52, %v4745_v50 }
 0x509   :  { %3596 = vst [vmem:[#allocation2 + $0x8] sm:$0xff] %v4058_v56 }
 0x525   :  { %v3518_v3 = vpop.f32.mrb[28].mxu1 }
 0x526   :  { %v3519_v4 = vadd.f32 %v3518_v3, %v3479_v1  ;;  %v3520_v5 = vpop.f32.mrb[29].mxu1 }
 0x527   :  { %v3521_v8 = vpop.f32.mrb[30].mxu1 }
 0x528   :  { %v4052_v9 = vmul.f32 -1.442695, %v3519_v4  ;;  %v3522_v12 = vpop.f32.mrb[31].mxu1 }
 0x52a   :  { %4750 = vpow2.f32 %v4052_v9 }
 0x534   :  { %v4751_v13 = vpop.eup %4750 }
 0x535   :  { %v3551_v2 = vadd.f32 1.0, %v4751_v13 }
 0x537   :  { %4752 = vrcp.f32 %v3551_v2 }
 0x541   :  { %v4753_v14 = vpop.eup %4752 }
 0x542   :  { %v4060_v16 = vpack.c.bf16 %v4753_v14, %v4753_v14 }
 0x544   :  { %v3437_v17 = vpop.f32.mrb[12].mxu0  ;;  %3599 = vst.msk [vmem:[#allocation2 + $0x18] sm:$0xf] %vm3598_vm4, %v4060_v16 }
 0x545   :  { %v4115_v19 = vadd.f32 %v3437_v17, %v2279_v15  ;;  %v3439_v20 = vpop.f32.mrb[13].mxu0 }
 0x546   :  { %v4116_v22 = vadd.f32 %v3439_v20, %v2283_v18  ;;  %v3441_v23 = vpop.f32.mrb[14].mxu0 }
 0x547   :  { %v4050_v24 = vmul.f32 -1.442695, %v4115_v19  ;;  %v3442_v26 = vpop.f32.mrb[15].mxu0 }
 0x548   :  { %v4051_v27 = vmul.f32 -1.442695, %v4116_v22 }
 0x549   :  { %4754 = vpow2.f32 %v4050_v24 }
 0x54a   :  { %4756 = vpow2.f32 %v4051_v27 }
 0x553   :  { %v4755_v28 = vpop.eup %4754 }
 0x554   :  { %v4757_v54 = vpop.eup %4756  ;;  %v3549_v29 = vadd.f32 1.0, %v4755_v28 }
 0x555   :  { %v3550_v30 = vadd.f32 1.0, %v4757_v54 }
 0x556   :  { %4758 = vrcp.f32 %v3549_v29 }
 0x557   :  { %4760 = vrcp.f32 %v3550_v30 }
 0x560   :  { %v4759_v25 = vpop.eup %4758 }
 0x561   :  { %v4761_v31 = vpop.eup %4760 }
 0x562   :  { %v4059_v6 = vpack.c.bf16 %v4761_v31, %v4759_v25 }
 0x564   :  { %3597 = vst [vmem:[#allocation2 + $0x10] sm:$0xff] %v4059_v6 }
 0x565   :  { %4795 = shalt.err (!%p4792_p12)
}
 0x566   :  { %s4796_s25 = scalar_lea.hbm %s6263_s10, 448 }
 0x567   :  { %p4797_p13 = scmp.ne.s32.totalorder %s6263_s10, %s4796_s25  ;;  %p4800_p0 = scmp.lt.u32.totalorder %s4796_s25, %s6263_s10 }
 0x569   :  { %p4802_p1 = pnand %p4800_p0, %p4797_p13 }
 0x56b   :  { %4805 = shalt.err (!%p4802_p1)
}
 0x56c   :  { %3611 = dma.vmem_to_hbm [thread:$0]  %s3609_s22, 448, %s6263_s10, [#allocation3]  }
 0x56d   :  { %4806 = dma.done.wait [#allocation3], 448  }
 0x56e   :  { %4807 = vsyncadd [#allocation3], 4294966848 }
 0x56f   :  { %4808 = dma.done.wait [#allocation5], 128  }
 0x570   :  { %4809 = vsyncadd [#allocation5], 4294967168 }
 0x571   :  { %3628 = vsyncpa [#allocation3], 1 }
 0x572   :  { %3629 = vsyncpa [#allocation5], 1 }

</bundles_post_ra>
